<compile_context>
chip_gen: v7x
topology: tpu7x:2x2x1
jax: 0.10.0
libtpu: 0.0.40
codegen_flags: <defaults>
</compile_context>

<pallas_src>
import functools
import math

import jax
import jax.numpy as jnp
import numpy as np
from jax.experimental import pallas as pl
from jax.experimental.pallas import tpu as pltpu


def _silu(x):
    # x * sigmoid(x); the reciprocal rides the EUP slot (approx), not the VALU.
    return x * pl.reciprocal(1.0 + jnp.exp(-x), approx=True)


def _silu_ref(x):
    return x * jax.nn.sigmoid(x)


def _softplus(x):
    return jnp.maximum(x, 0.0) + jnp.log(1.0 + jnp.exp(-jnp.abs(x)))


def residual_block_kernel(x_ref, w_in_ref, conv_w_ref, conv_b_ref,
                          w_delta_ref, w_dt_ref, b_dt_ref,
                          a_logT_ref, d_param_ref, w_bc_ref, w_out_ref, rms_w_ref,
                          out_ref,
                          dA_ref, dBu_ref, hist_ref,
                          *, eps):
    f32 = jnp.float32
    bf16 = jnp.bfloat16

    x = x_ref[0]                                   # (L, D) original input (residual)
    L, D = x.shape
    d_inner = w_in_ref.shape[1] // 2
    d_state = w_bc_ref.shape[1] // 2
    d_conv = conv_w_ref.shape[0]
    n = d_state

    # ---- RMSNorm (f32) -------------------------------------------------------
    ms = jnp.mean(x * x, axis=-1, keepdims=True)                       # (L, 1)
    xn = x * jax.lax.rsqrt(ms + eps) * rms_w_ref[...]                  # (L, D)

    # ---- fused in_proj (x half || res half): one lane-dense bf16 MXU GEMM -----
    xpres = jnp.dot(xn.astype(bf16), w_in_ref[...],
                    preferred_element_type=f32)                        # (L, 2*d_inner)
    xp = xpres[:, :d_inner]                                            # (L, d_inner)
    res = xpres[:, d_inner:]                                           # (L, d_inner)

    # ---- causal depthwise conv over the seq axis (pure VPU, no scratch) -------
    # conv[t] = sum_k w[k] * xp[t - (d_conv-1) + k]   (zero for negative index)
    conv = jnp.zeros((L, d_inner), f32)
    for k in range(d_conv):                        # d_conv is tiny & static
        s = d_conv - 1 - k                         # downward shift of tap k
        if s == 0:
            term = xp
        else:
            term = jnp.concatenate(
                [jnp.zeros((s, d_inner), f32), xp[:L - s, :]], axis=0)
        conv = conv + term * conv_w_ref[pl.ds(k, 1), :]
    u = _silu(conv + conv_b_ref[...])              # (L, d_inner)

    # ---- x_proj: fused B||C bf16 GEMM; tiny dt path stays f32 (feeds exp) -----
    u_bf = u.astype(bf16)
    bc = jnp.dot(u_bf, w_bc_ref[...], preferred_element_type=f32)      # (L, 2*n)
    Bm = bc[:, :n]                                                     # (L, n)
    Cm = bc[:, n:]                                                     # (L, n)
    delta_r = jnp.dot(u, w_delta_ref[...], preferred_element_type=f32)  # (L, dt_rank)
    delta = _softplus(
        jnp.dot(delta_r, w_dt_ref[...], preferred_element_type=f32) + b_dt_ref[...]
    )                                                                  # (L, d_inner)

    # ---- bulk per-timestep scan operands (t-major, n rows per step) -----------
    # dA_ref / dBu_ref are (L*n, d_inner); row t*n + i is state-index i of step t.
    # Per-state strided stores keep everything 2-D (no lane<->sublane relayouts);
    # the serial loop then reads one contiguous (n, d_inner) slab per step.
    A_T = -jnp.exp(a_logT_ref[...])                                    # (n, d_inner)
    du = delta * u                                                     # (L, d_inner)
    for i in range(n):                              # d_state is small & static
        rows = pl.ds(i, L, stride=n)
        dA_ref[rows, :] = jnp.exp(delta * A_T[i:i + 1, :])
        dBu_ref[rows, :] = Bm[:, i:i + 1] * du

    # ---- selective scan: pure VPU on the loop-carried chain --------------------
    def scan_body(t, h):
        base = pl.multiple_of(t * n, n)
        h = dA_ref[pl.ds(base, n), :] * h + dBu_ref[pl.ds(base, n), :]
        hist_ref[pl.ds(base, n), :] = h            # consumed by the bulk y below
        return h

    h0 = jnp.zeros((n, d_inner), f32)
    unroll = True if L <= 16 else 8                 # full unroll only for tiny L
    jax.lax.fori_loop(0, L, scan_body, h0, unroll=unroll)

    # ---- bulk y: y[t] = sum_i C[t,i] * h_t[i,:] + D * u[t]  (off the chain) ----
    y = u * d_param_ref[...]
    for i in range(n):
        y = y + Cm[:, i:i + 1] * hist_ref[pl.ds(i, L, stride=n), :]

    # ---- gate, out_proj (bf16 MXU), residual -----------------------------------
    out = jnp.dot((y * _silu(res)).astype(bf16), w_out_ref[...],
                  preferred_element_type=f32) + x
    out_ref[0] = out.astype(out_ref.dtype)


def _vmem_limit_bytes(L, D, d_inner, d_state):
    """Layout-aware scoped-VMEM estimate; raise the limit only when needed."""
    def rup(v, m):
        return -(-v // m) * m

    def padded(shape, itemsize=4):
        lead = int(np.prod(shape[:-2])) if len(shape) > 2 else 1
        return lead * rup(shape[-2], 8) * rup(shape[-1], 128) * itemsize

    scratch = 3 * padded((L * d_state, d_inner))          # dA, dBu, hist
    blocks = 2 * 2 * padded((L, D))                       # double-buffered x / out
    weights = 2 * (padded((D, 2 * d_inner), 2)            # bf16 fused in_proj
                   + padded((d_inner, 2 * d_state), 2)    # bf16 fused B||C
                   + padded((d_inner, D), 2)              # bf16 out_proj
                   + padded((d_state, d_inner))           # A_log^T
                   + padded((8, d_inner))                 # conv_w + small f32 params
                   + 6 * padded((1, d_inner))
                   + padded((d_inner, 8)))
    est = scratch + blocks + weights
    if est <= 12 * 1024 * 1024:        # comfortably inside v5e's ~16 MiB default
        return None
    try:
        cap = int(pltpu.get_tpu_info().vmem_capacity_bytes * 3 // 4)
    except Exception:
        cap = 48 * 1024 * 1024         # conservative: below v7x's 64 MiB physical
    # TODO(synk): at realistic L / d_inner, chunk L (grid axis, h in scratch) and
    #             tile d_inner instead of just raising the limit.
    return int(min(max(est * 3 // 2, 16 * 1024 * 1024), cap))


def residual_block_forward(x, params, eps=1e-5):
    Bsz, L, D = x.shape
    (W_in_x, W_in_res, conv_w, conv_b, W_delta, W_B, W_C,
     W_dt, b_dt, A_logT, D_param, W_out, rms_w) = params
    d_inner = W_in_x.shape[1]
    d_state = W_B.shape[1]

    bf16 = jnp.bfloat16
    # Fused bf16 weights for the big projection GEMMs (MXU-native, lane-dense
    # outputs); conv / dt / scan parameters stay f32 (precision-sensitive paths).
    W_in = jnp.concatenate([W_in_x, W_in_res], axis=1).astype(bf16)  # (D, 2*d_inner)
    W_bc = jnp.concatenate([W_B, W_C], axis=1).astype(bf16)          # (d_inner, 2*n)
    kparams = (W_in, conv_w, conv_b, W_delta, W_dt, b_dt,
               A_logT, D_param, W_bc, W_out.astype(bf16), rms_w)

    def w_spec(a):
        # TODO(synk): pipeline_mode=pl.Buffered(1) on these grid-invariant weights
        #             halves weight VMEM at realistic d_inner.
        return pl.BlockSpec(a.shape, lambda b, _n=a.ndim: (0,) * _n)

    in_specs = [pl.BlockSpec((1, L, D), lambda b: (b, 0, 0))]
    in_specs += [w_spec(p) for p in kparams]
    out_spec = pl.BlockSpec((1, L, D), lambda b: (b, 0, 0))

    scratch_shapes = [
        pltpu.VMEM((L * d_state, d_inner), jnp.float32),   # dA  (t-major slabs)
        pltpu.VMEM((L * d_state, d_inner), jnp.float32),   # dBu (t-major slabs)
        pltpu.VMEM((L * d_state, d_inner), jnp.float32),   # h history for bulk y
    ]

    cp_kwargs = {"dimension_semantics": ("parallel",)}
    vlim = _vmem_limit_bytes(L, D, d_inner, d_state)
    if vlim is not None:
        cp_kwargs["vmem_limit_bytes"] = vlim

    kernel = functools.partial(residual_block_kernel, eps=eps)
    # Grid over batch: the scan is inherently sequential per sequence; batch is
    # the only truly parallel axis (covers both TensorCores on v7x).
    return pl.pallas_call(
        kernel,
        out_shape=jax.ShapeDtypeStruct((Bsz, L, D), x.dtype),
        grid=(Bsz,),
        in_specs=in_specs,
        out_specs=out_spec,
        scratch_shapes=scratch_shapes,
        compiler_params=pltpu.CompilerParams(**cp_kwargs),
    )(x, *kparams)


def ref_forward(x, params):
    """Pure-JAX reference mirroring the PyTorch ResidualBlock.forward."""
    (W_in_x, W_in_res, conv_w, conv_b, W_delta, W_B, W_C,
     W_dt, b_dt, A_logT, D_param, W_out, rms_w) = params
    eps = 1e-5
    xn = x * jax.lax.rsqrt(jnp.mean(x * x, axis=-1, keepdims=True) + eps) * rms_w[0]
    xp = xn @ W_in_x
    res = xn @ W_in_res
    Bsz, L, _ = x.shape
    K = conv_w.shape[0]
    xpad = jnp.pad(xp, ((0, 0), (K - 1, 0), (0, 0)))
    conv = sum(xpad[:, k:k + L, :] * conv_w[k] for k in range(K)) + conv_b[0]
    u = _silu_ref(conv)
    delta = _softplus((u @ W_delta) @ W_dt + b_dt[0])
    Bm = u @ W_B
    Cm = u @ W_C
    A = -jnp.exp(A_logT.T)                                 # (d_inner, n)
    h = jnp.zeros((Bsz, A.shape[0], A.shape[1]), jnp.float32)
    ys = []
    for t in range(L):
        dA = jnp.exp(delta[:, t, :, None] * A[None])
        dBu = delta[:, t, :, None] * Bm[:, t, None, :] * u[:, t, :, None]
        h = dA * h + dBu
        y_t = jnp.einsum('bdn,bn->bd', h, Cm[:, t]) + u[:, t] * D_param[0]
        ys.append(y_t)
    y = jnp.stack(ys, axis=1)
    y = y * _silu_ref(res)
    return y @ W_out + x


if __name__ == "__main__":
    # ModelArgs(d_model=32) -> d_inner=64, dt_rank=ceil(32/16)=2, d_state=16, d_conv=4
    d_model, seq_len, batch = 32, 8, 2
    expand, d_state, d_conv = 2, 16, 4
    d_inner = expand * d_model
    dt_rank = math.ceil(d_model / 16)

    key = jax.random.PRNGKey(0)
    ks = jax.random.split(key, 11)

    def init(k, shape, fan_in):
        return (jax.random.normal(k, shape, jnp.float32) / np.sqrt(fan_in)).astype(jnp.float32)

    W_in_x = init(ks[0], (d_model, d_inner), d_model)       # in_proj (x half), bias=False
    W_in_res = init(ks[1], (d_model, d_inner), d_model)     # in_proj (res half)
    conv_w = init(ks[2], (d_conv, d_inner), d_conv)         # depthwise conv weight
    conv_b = init(ks[3], (1, d_inner), d_conv)              # conv bias
    W_delta = init(ks[4], (d_inner, dt_rank), d_inner)      # x_proj -> delta
    W_B = init(ks[5], (d_inner, d_state), d_inner)          # x_proj -> B
    W_C = init(ks[6], (d_inner, d_state), d_inner)          # x_proj -> C
    W_dt = init(ks[7], (dt_rank, d_inner), dt_rank)         # dt_proj weight
    b_dt = init(ks[8], (1, d_inner), dt_rank)               # dt_proj bias
    A_logT = jnp.asarray(
        jnp.broadcast_to(jnp.log(jnp.arange(1, d_state + 1, dtype=jnp.float32))[:, None],
                         (d_state, d_inner)))               # A_log (pre-transposed: n x d)
    D_param = jnp.ones((1, d_inner), jnp.float32)
    W_out = init(ks[9], (d_inner, d_model), d_inner)        # out_proj, bias=False
    rms_w = jnp.ones((1, d_model), jnp.float32)             # RMSNorm weight

    params = (W_in_x, W_in_res, conv_w, conv_b, W_delta, W_B, W_C,
              W_dt, b_dt, A_logT, D_param, W_out, rms_w)

    x = jax.random.normal(ks[10], (batch, seq_len, d_model), jnp.float32)

    out = jax.block_until_ready(residual_block_forward(x, params))
    ref = jax.block_until_ready(ref_forward(x, params))

    assert out.shape == (batch, seq_len, d_model)
    # bf16 projection GEMMs + approx-reciprocal SiLU in the kernel vs f32 reference.
    np.testing.assert_allclose(np.asarray(out), np.asarray(ref), rtol=2e-2, atol=2e-2)
    print("KERNEL_OK")
</pallas_src>

<mosaic_0001>
module attributes {stable_mosaic.version = 11 : i64} {
  func.func @residual_block_kernel(%arg0: i32, %arg1: memref<1x8x32xf32, #tpu.memory_space<vmem>>, %arg2: memref<32x128xbf16, #tpu.memory_space<vmem>>, %arg3: memref<4x64xf32, #tpu.memory_space<vmem>>, %arg4: memref<1x64xf32, #tpu.memory_space<vmem>>, %arg5: memref<64x2xf32, #tpu.memory_space<vmem>>, %arg6: memref<2x64xf32, #tpu.memory_space<vmem>>, %arg7: memref<1x64xf32, #tpu.memory_space<vmem>>, %arg8: memref<16x64xf32, #tpu.memory_space<vmem>>, %arg9: memref<1x64xf32, #tpu.memory_space<vmem>>, %arg10: memref<64x32xbf16, #tpu.memory_space<vmem>>, %arg11: memref<64x32xbf16, #tpu.memory_space<vmem>>, %arg12: memref<1x32xf32, #tpu.memory_space<vmem>>, %arg13: memref<1x8x32xf32, #tpu.memory_space<vmem>>, %arg14: memref<128x64xf32, #tpu.memory_space<vmem>>, %arg15: memref<128x64xf32, #tpu.memory_space<vmem>>, %arg16: memref<128x64xf32, #tpu.memory_space<vmem>>) attributes {dimension_semantics = [#tpu.dimension_semantics<parallel>], iteration_bounds = array<i64: 2>, scalar_prefetch = 0 : i64, scratch_operands = 3 : i64, tpu.core_type = #tpu.core_type<tc>, window_params = [{transform_indices = @transform_0, window_bounds = array<i64: 1, 8, 32>}, {pipeline_mode = #tpu.pipeline_mode<synchronous>, transform_indices = @transform_1, window_bounds = array<i64: 32, 128>}, {pipeline_mode = #tpu.pipeline_mode<synchronous>, transform_indices = @transform_2, window_bounds = array<i64: 4, 64>}, {pipeline_mode = #tpu.pipeline_mode<synchronous>, transform_indices = @transform_3, window_bounds = array<i64: 1, 64>}, {pipeline_mode = #tpu.pipeline_mode<synchronous>, transform_indices = @transform_4, window_bounds = array<i64: 64, 2>}, {pipeline_mode = #tpu.pipeline_mode<synchronous>, transform_indices = @transform_5, window_bounds = array<i64: 2, 64>}, {pipeline_mode = #tpu.pipeline_mode<synchronous>, transform_indices = @transform_6, window_bounds = array<i64: 1, 64>}, {pipeline_mode = #tpu.pipeline_mode<synchronous>, transform_indices = @transform_7, window_bounds = array<i64: 16, 64>}, {pipeline_mode = #tpu.pipeline_mode<synchronous>, transform_indices = @transform_8, window_bounds = array<i64: 1, 64>}, {pipeline_mode = #tpu.pipeline_mode<synchronous>, transform_indices = @transform_9, window_bounds = array<i64: 64, 32>}, {pipeline_mode = #tpu.pipeline_mode<synchronous>, transform_indices = @transform_10, window_bounds = array<i64: 64, 32>}, {pipeline_mode = #tpu.pipeline_mode<synchronous>, transform_indices = @transform_11, window_bounds = array<i64: 1, 32>}, {transform_indices = @transform_12, window_bounds = array<i64: 1, 8, 32>}]} {
    %c0 = arith.constant 0 : index
    %c0_0 = arith.constant 0 : index
    %c0_1 = arith.constant 0 : index
    %0 = vector.load %arg1[%c0, %c0_0, %c0_1] : memref<1x8x32xf32, #tpu.memory_space<vmem>>, vector<1x8x32xf32>
    %1 = vector.shape_cast %0 : vector<1x8x32xf32> to vector<8x32xf32>
    %2 = arith.mulf %1, %1 : vector<8x32xf32>
    %cst = arith.constant dense<0.000000e+00> : vector<8xf32>
    %3 = vector.multi_reduction <add>, %2, %cst [1] : vector<8x32xf32> to vector<8xf32>
    %4 = vector.shape_cast %3 : vector<8xf32> to vector<8x1xf32>
    %cst_2 = arith.constant 3.200000e+01 : f32
    %5 = vector.broadcast %cst_2 : f32 to vector<8x1xf32>
    %6 = arith.divf %4, %5 : vector<8x1xf32>
    %cst_3 = arith.constant 9.99999974E-6 : f32
    %7 = vector.broadcast %cst_3 : f32 to vector<8x1xf32>
    %8 = arith.addf %6, %7 : vector<8x1xf32>
    %9 = math.rsqrt %8 : vector<8x1xf32>
    %10 = vector.broadcast %9 : vector<8x1xf32> to vector<8x32xf32>
    %11 = arith.mulf %1, %10 : vector<8x32xf32>
    %c0_4 = arith.constant 0 : index
    %c0_5 = arith.constant 0 : index
    %12 = vector.load %arg12[%c0_4, %c0_5] : memref<1x32xf32, #tpu.memory_space<vmem>>, vector<1x32xf32>
    %13 = vector.broadcast %12 : vector<1x32xf32> to vector<8x32xf32>
    %14 = arith.mulf %11, %13 : vector<8x32xf32>
    %15 = arith.truncf %14 : vector<8x32xf32> to vector<8x32xbf16>
    %c0_6 = arith.constant 0 : index
    %c0_7 = arith.constant 0 : index
    %16 = vector.load %arg2[%c0_6, %c0_7] : memref<32x128xbf16, #tpu.memory_space<vmem>>, vector<32x128xbf16>
    %cst_8 = arith.constant dense<0.000000e+00> : vector<8x128xf32>
    %17 = tpu.matmul %15, %16, %cst_8 {dimension_numbers = #tpu.dot_dimension_numbers<[1], [0], [0], [1], [0, 0, 1, 1], [], []>} : vector<8x32xbf16>, vector<32x128xbf16>, vector<8x128xf32> -> vector<8x128xf32>
    %18 = vector.extract_strided_slice %17 {offsets = [0, 0], sizes = [8, 64], strides = [1, 1]} : vector<8x128xf32> to vector<8x64xf32>
    %19 = vector.extract_strided_slice %17 {offsets = [0, 64], sizes = [8, 64], strides = [1, 1]} : vector<8x128xf32> to vector<8x64xf32>
    %cst_9 = arith.constant 0.000000e+00 : f32
    %20 = vector.broadcast %cst_9 : f32 to vector<8x64xf32>
    %cst_10 = arith.constant 0.000000e+00 : f32
    %21 = vector.broadcast %cst_10 : f32 to vector<3x64xf32>
    %22 = vector.extract_strided_slice %18 {offsets = [0, 0], sizes = [5, 64], strides = [1, 1]} : vector<8x64xf32> to vector<5x64xf32>
    %23 = tpu.concatenate %21, %22 in 0 : vector<3x64xf32>, vector<5x64xf32> -> vector<8x64xf32>
    %c0_11 = arith.constant 0 : index
    %c0_12 = arith.constant 0 : index
    %24 = vector.load %arg3[%c0_11, %c0_12] : memref<4x64xf32, #tpu.memory_space<vmem>>, vector<1x64xf32>
    %25 = vector.broadcast %24 : vector<1x64xf32> to vector<8x64xf32>
    %26 = arith.mulf %23, %25 : vector<8x64xf32>
    %27 = arith.addf %20, %26 : vector<8x64xf32>
    %cst_13 = arith.constant 0.000000e+00 : f32
    %28 = vector.broadcast %cst_13 : f32 to vector<2x64xf32>
    %29 = vector.extract_strided_slice %18 {offsets = [0, 0], sizes = [6, 64], strides = [1, 1]} : vector<8x64xf32> to vector<6x64xf32>
    %30 = tpu.concatenate %28, %29 in 0 : vector<2x64xf32>, vector<6x64xf32> -> vector<8x64xf32>
    %c1 = arith.constant 1 : index
    %c0_14 = arith.constant 0 : index
    %31 = vector.load %arg3[%c1, %c0_14] : memref<4x64xf32, #tpu.memory_space<vmem>>, vector<1x64xf32>
    %32 = vector.broadcast %31 : vector<1x64xf32> to vector<8x64xf32>
    %33 = arith.mulf %30, %32 : vector<8x64xf32>
    %34 = arith.addf %27, %33 : vector<8x64xf32>
    %cst_15 = arith.constant 0.000000e+00 : f32
    %35 = vector.broadcast %cst_15 : f32 to vector<1x64xf32>
    %36 = vector.extract_strided_slice %18 {offsets = [0, 0], sizes = [7, 64], strides = [1, 1]} : vector<8x64xf32> to vector<7x64xf32>
    %37 = tpu.concatenate %35, %36 in 0 : vector<1x64xf32>, vector<7x64xf32> -> vector<8x64xf32>
    %c2 = arith.constant 2 : index
    %c0_16 = arith.constant 0 : index
    %38 = vector.load %arg3[%c2, %c0_16] : memref<4x64xf32, #tpu.memory_space<vmem>>, vector<1x64xf32>
    %39 = vector.broadcast %38 : vector<1x64xf32> to vector<8x64xf32>
    %40 = arith.mulf %37, %39 : vector<8x64xf32>
    %41 = arith.addf %34, %40 : vector<8x64xf32>
    %c3 = arith.constant 3 : index
    %c0_17 = arith.constant 0 : index
    %42 = vector.load %arg3[%c3, %c0_17] : memref<4x64xf32, #tpu.memory_space<vmem>>, vector<1x64xf32>
    %43 = vector.broadcast %42 : vector<1x64xf32> to vector<8x64xf32>
    %44 = arith.mulf %18, %43 : vector<8x64xf32>
    %45 = arith.addf %41, %44 : vector<8x64xf32>
    %c0_18 = arith.constant 0 : index
    %c0_19 = arith.constant 0 : index
    %46 = vector.load %arg4[%c0_18, %c0_19] : memref<1x64xf32, #tpu.memory_space<vmem>>, vector<1x64xf32>
    %47 = vector.broadcast %46 : vector<1x64xf32> to vector<8x64xf32>
    %48 = arith.addf %45, %47 : vector<8x64xf32>
    %cst_20 = arith.constant 0.000000e+00 : f32
    %49 = vector.broadcast %cst_20 : f32 to vector<8x64xf32>
    %50 = arith.subf %49, %48 : vector<8x64xf32>
    %51 = math.exp %50 : vector<8x64xf32>
    %cst_21 = arith.constant 1.000000e+00 : f32
    %52 = vector.broadcast %cst_21 : f32 to vector<8x64xf32>
    %53 = arith.addf %52, %51 : vector<8x64xf32>
    %54 = tpu.reciprocal %53 {approx = true} : vector<8x64xf32> -> vector<8x64xf32>
    %55 = arith.mulf %48, %54 : vector<8x64xf32>
    %56 = arith.truncf %55 : vector<8x64xf32> to vector<8x64xbf16>
    %c0_22 = arith.constant 0 : index
    %c0_23 = arith.constant 0 : index
    %57 = vector.load %arg10[%c0_22, %c0_23] : memref<64x32xbf16, #tpu.memory_space<vmem>>, vector<64x32xbf16>
    %cst_24 = arith.constant dense<0.000000e+00> : vector<8x32xf32>
    %58 = tpu.matmul %56, %57, %cst_24 {dimension_numbers = #tpu.dot_dimension_numbers<[1], [0], [0], [1], [0, 0, 1, 1], [], []>} : vector<8x64xbf16>, vector<64x32xbf16>, vector<8x32xf32> -> vector<8x32xf32>
    %59 = vector.extract_strided_slice %58 {offsets = [0, 0], sizes = [8, 16], strides = [1, 1]} : vector<8x32xf32> to vector<8x16xf32>
    %60 = vector.extract_strided_slice %58 {offsets = [0, 16], sizes = [8, 16], strides = [1, 1]} : vector<8x32xf32> to vector<8x16xf32>
    %c0_25 = arith.constant 0 : index
    %c0_26 = arith.constant 0 : index
    %61 = vector.load %arg5[%c0_25, %c0_26] : memref<64x2xf32, #tpu.memory_space<vmem>>, vector<64x2xf32>
    %cst_27 = arith.constant dense<0.000000e+00> : vector<8x2xf32>
    %62 = tpu.matmul %55, %61, %cst_27 {dimension_numbers = #tpu.dot_dimension_numbers<[1], [0], [0], [1], [0, 0, 1, 1], [], []>} : vector<8x64xf32>, vector<64x2xf32>, vector<8x2xf32> -> vector<8x2xf32>
    %c0_28 = arith.constant 0 : index
    %c0_29 = arith.constant 0 : index
    %63 = vector.load %arg6[%c0_28, %c0_29] : memref<2x64xf32, #tpu.memory_space<vmem>>, vector<2x64xf32>
    %cst_30 = arith.constant dense<0.000000e+00> : vector<8x64xf32>
    %64 = tpu.matmul %62, %63, %cst_30 {dimension_numbers = #tpu.dot_dimension_numbers<[1], [0], [0], [1], [0, 0, 1, 1], [], []>} : vector<8x2xf32>, vector<2x64xf32>, vector<8x64xf32> -> vector<8x64xf32>
    %c0_31 = arith.constant 0 : index
    %c0_32 = arith.constant 0 : index
    %65 = vector.load %arg7[%c0_31, %c0_32] : memref<1x64xf32, #tpu.memory_space<vmem>>, vector<1x64xf32>
    %66 = vector.broadcast %65 : vector<1x64xf32> to vector<8x64xf32>
    %67 = arith.addf %64, %66 : vector<8x64xf32>
    %cst_33 = arith.constant 0.000000e+00 : f32
    %68 = vector.broadcast %cst_33 : f32 to vector<8x64xf32>
    %69 = arith.maximumf %67, %68 : vector<8x64xf32>
    %70 = math.absf %67 : vector<8x64xf32>
    %cst_34 = arith.constant 0.000000e+00 : f32
    %71 = vector.broadcast %cst_34 : f32 to vector<8x64xf32>
    %72 = arith.subf %71, %70 : vector<8x64xf32>
    %73 = math.exp %72 : vector<8x64xf32>
    %cst_35 = arith.constant 1.000000e+00 : f32
    %74 = vector.broadcast %cst_35 : f32 to vector<8x64xf32>
    %75 = arith.addf %74, %73 : vector<8x64xf32>
    %76 = math.log %75 : vector<8x64xf32>
    %77 = arith.addf %69, %76 : vector<8x64xf32>
    %c0_36 = arith.constant 0 : index
    %c0_37 = arith.constant 0 : index
    %78 = vector.load %arg8[%c0_36, %c0_37] : memref<16x64xf32, #tpu.memory_space<vmem>>, vector<16x64xf32>
    %79 = math.exp %78 : vector<16x64xf32>
    %cst_38 = arith.constant 0.000000e+00 : f32
    %80 = vector.broadcast %cst_38 : f32 to vector<16x64xf32>
    %81 = arith.subf %80, %79 : vector<16x64xf32>
    %82 = arith.mulf %77, %55 : vector<8x64xf32>
    %83 = vector.extract_strided_slice %81 {offsets = [0, 0], sizes = [1, 64], strides = [1, 1]} : vector<16x64xf32> to vector<1x64xf32>
    %84 = vector.broadcast %83 : vector<1x64xf32> to vector<8x64xf32>
    %85 = arith.mulf %77, %84 : vector<8x64xf32>
    %86 = math.exp %85 : vector<8x64xf32>
    %c0_39 = arith.constant 0 : index
    %c0_40 = arith.constant 0 : index
    %87 = tpu.strided_load %arg14[%c0_39, %c0_40] {strides = array<i32: 16, 1>} : memref<128x64xf32, #tpu.memory_space<vmem>>, vector<8x64xf32>
    tpu.strided_store %arg14[%c0_39, %c0_40], %86 {strides = array<i32: 16, 1>} : memref<128x64xf32, #tpu.memory_space<vmem>>, vector<8x64xf32>
    %88 = vector.extract_strided_slice %59 {offsets = [0, 0], sizes = [8, 1], strides = [1, 1]} : vector<8x16xf32> to vector<8x1xf32>
    %89 = vector.broadcast %88 : vector<8x1xf32> to vector<8x64xf32>
    %90 = arith.mulf %89, %82 : vector<8x64xf32>
    %c0_41 = arith.constant 0 : index
    %c0_42 = arith.constant 0 : index
    %91 = tpu.strided_load %arg15[%c0_41, %c0_42] {strides = array<i32: 16, 1>} : memref<128x64xf32, #tpu.memory_space<vmem>>, vector<8x64xf32>
    tpu.strided_store %arg15[%c0_41, %c0_42], %90 {strides = array<i32: 16, 1>} : memref<128x64xf32, #tpu.memory_space<vmem>>, vector<8x64xf32>
    %92 = vector.extract_strided_slice %81 {offsets = [1, 0], sizes = [1, 64], strides = [1, 1]} : vector<16x64xf32> to vector<1x64xf32>
    %93 = vector.broadcast %92 : vector<1x64xf32> to vector<8x64xf32>
    %94 = arith.mulf %77, %93 : vector<8x64xf32>
    %95 = math.exp %94 : vector<8x64xf32>
    %c1_43 = arith.constant 1 : index
    %c0_44 = arith.constant 0 : index
    %96 = tpu.strided_load %arg14[%c1_43, %c0_44] {strides = array<i32: 16, 1>} : memref<128x64xf32, #tpu.memory_space<vmem>>, vector<8x64xf32>
    tpu.strided_store %arg14[%c1_43, %c0_44], %95 {strides = array<i32: 16, 1>} : memref<128x64xf32, #tpu.memory_space<vmem>>, vector<8x64xf32>
    %97 = vector.extract_strided_slice %59 {offsets = [0, 1], sizes = [8, 1], strides = [1, 1]} : vector<8x16xf32> to vector<8x1xf32>
    %98 = vector.broadcast %97 : vector<8x1xf32> to vector<8x64xf32>
    %99 = arith.mulf %98, %82 : vector<8x64xf32>
    %c1_45 = arith.constant 1 : index
    %c0_46 = arith.constant 0 : index
    %100 = tpu.strided_load %arg15[%c1_45, %c0_46] {strides = array<i32: 16, 1>} : memref<128x64xf32, #tpu.memory_space<vmem>>, vector<8x64xf32>
    tpu.strided_store %arg15[%c1_45, %c0_46], %99 {strides = array<i32: 16, 1>} : memref<128x64xf32, #tpu.memory_space<vmem>>, vector<8x64xf32>
    %101 = vector.extract_strided_slice %81 {offsets = [2, 0], sizes = [1, 64], strides = [1, 1]} : vector<16x64xf32> to vector<1x64xf32>
    %102 = vector.broadcast %101 : vector<1x64xf32> to vector<8x64xf32>
    %103 = arith.mulf %77, %102 : vector<8x64xf32>
    %104 = math.exp %103 : vector<8x64xf32>
    %c2_47 = arith.constant 2 : index
    %c0_48 = arith.constant 0 : index
    %105 = tpu.strided_load %arg14[%c2_47, %c0_48] {strides = array<i32: 16, 1>} : memref<128x64xf32, #tpu.memory_space<vmem>>, vector<8x64xf32>
    tpu.strided_store %arg14[%c2_47, %c0_48], %104 {strides = array<i32: 16, 1>} : memref<128x64xf32, #tpu.memory_space<vmem>>, vector<8x64xf32>
    %106 = vector.extract_strided_slice %59 {offsets = [0, 2], sizes = [8, 1], strides = [1, 1]} : vector<8x16xf32> to vector<8x1xf32>
    %107 = vector.broadcast %106 : vector<8x1xf32> to vector<8x64xf32>
    %108 = arith.mulf %107, %82 : vector<8x64xf32>
    %c2_49 = arith.constant 2 : index
    %c0_50 = arith.constant 0 : index
    %109 = tpu.strided_load %arg15[%c2_49, %c0_50] {strides = array<i32: 16, 1>} : memref<128x64xf32, #tpu.memory_space<vmem>>, vector<8x64xf32>
    tpu.strided_store %arg15[%c2_49, %c0_50], %108 {strides = array<i32: 16, 1>} : memref<128x64xf32, #tpu.memory_space<vmem>>, vector<8x64xf32>
    %110 = vector.extract_strided_slice %81 {offsets = [3, 0], sizes = [1, 64], strides = [1, 1]} : vector<16x64xf32> to vector<1x64xf32>
    %111 = vector.broadcast %110 : vector<1x64xf32> to vector<8x64xf32>
    %112 = arith.mulf %77, %111 : vector<8x64xf32>
    %113 = math.exp %112 : vector<8x64xf32>
    %c3_51 = arith.constant 3 : index
    %c0_52 = arith.constant 0 : index
    %114 = tpu.strided_load %arg14[%c3_51, %c0_52] {strides = array<i32: 16, 1>} : memref<128x64xf32, #tpu.memory_space<vmem>>, vector<8x64xf32>
    tpu.strided_store %arg14[%c3_51, %c0_52], %113 {strides = array<i32: 16, 1>} : memref<128x64xf32, #tpu.memory_space<vmem>>, vector<8x64xf32>
    %115 = vector.extract_strided_slice %59 {offsets = [0, 3], sizes = [8, 1], strides = [1, 1]} : vector<8x16xf32> to vector<8x1xf32>
    %116 = vector.broadcast %115 : vector<8x1xf32> to vector<8x64xf32>
    %117 = arith.mulf %116, %82 : vector<8x64xf32>
    %c3_53 = arith.constant 3 : index
    %c0_54 = arith.constant 0 : index
    %118 = tpu.strided_load %arg15[%c3_53, %c0_54] {strides = array<i32: 16, 1>} : memref<128x64xf32, #tpu.memory_space<vmem>>, vector<8x64xf32>
    tpu.strided_store %arg15[%c3_53, %c0_54], %117 {strides = array<i32: 16, 1>} : memref<128x64xf32, #tpu.memory_space<vmem>>, vector<8x64xf32>
    %119 = vector.extract_strided_slice %81 {offsets = [4, 0], sizes = [1, 64], strides = [1, 1]} : vector<16x64xf32> to vector<1x64xf32>
    %120 = vector.broadcast %119 : vector<1x64xf32> to vector<8x64xf32>
    %121 = arith.mulf %77, %120 : vector<8x64xf32>
    %122 = math.exp %121 : vector<8x64xf32>
    %c4 = arith.constant 4 : index
    %c0_55 = arith.constant 0 : index
    %123 = tpu.strided_load %arg14[%c4, %c0_55] {strides = array<i32: 16, 1>} : memref<128x64xf32, #tpu.memory_space<vmem>>, vector<8x64xf32>
    tpu.strided_store %arg14[%c4, %c0_55], %122 {strides = array<i32: 16, 1>} : memref<128x64xf32, #tpu.memory_space<vmem>>, vector<8x64xf32>
    %124 = vector.extract_strided_slice %59 {offsets = [0, 4], sizes = [8, 1], strides = [1, 1]} : vector<8x16xf32> to vector<8x1xf32>
    %125 = vector.broadcast %124 : vector<8x1xf32> to vector<8x64xf32>
    %126 = arith.mulf %125, %82 : vector<8x64xf32>
    %c4_56 = arith.constant 4 : index
    %c0_57 = arith.constant 0 : index
    %127 = tpu.strided_load %arg15[%c4_56, %c0_57] {strides = array<i32: 16, 1>} : memref<128x64xf32, #tpu.memory_space<vmem>>, vector<8x64xf32>
    tpu.strided_store %arg15[%c4_56, %c0_57], %126 {strides = array<i32: 16, 1>} : memref<128x64xf32, #tpu.memory_space<vmem>>, vector<8x64xf32>
    %128 = vector.extract_strided_slice %81 {offsets = [5, 0], sizes = [1, 64], strides = [1, 1]} : vector<16x64xf32> to vector<1x64xf32>
    %129 = vector.broadcast %128 : vector<1x64xf32> to vector<8x64xf32>
    %130 = arith.mulf %77, %129 : vector<8x64xf32>
    %131 = math.exp %130 : vector<8x64xf32>
    %c5 = arith.constant 5 : index
    %c0_58 = arith.constant 0 : index
    %132 = tpu.strided_load %arg14[%c5, %c0_58] {strides = array<i32: 16, 1>} : memref<128x64xf32, #tpu.memory_space<vmem>>, vector<8x64xf32>
    tpu.strided_store %arg14[%c5, %c0_58], %131 {strides = array<i32: 16, 1>} : memref<128x64xf32, #tpu.memory_space<vmem>>, vector<8x64xf32>
    %133 = vector.extract_strided_slice %59 {offsets = [0, 5], sizes = [8, 1], strides = [1, 1]} : vector<8x16xf32> to vector<8x1xf32>
    %134 = vector.broadcast %133 : vector<8x1xf32> to vector<8x64xf32>
    %135 = arith.mulf %134, %82 : vector<8x64xf32>
    %c5_59 = arith.constant 5 : index
    %c0_60 = arith.constant 0 : index
    %136 = tpu.strided_load %arg15[%c5_59, %c0_60] {strides = array<i32: 16, 1>} : memref<128x64xf32, #tpu.memory_space<vmem>>, vector<8x64xf32>
    tpu.strided_store %arg15[%c5_59, %c0_60], %135 {strides = array<i32: 16, 1>} : memref<128x64xf32, #tpu.memory_space<vmem>>, vector<8x64xf32>
    %137 = vector.extract_strided_slice %81 {offsets = [6, 0], sizes = [1, 64], strides = [1, 1]} : vector<16x64xf32> to vector<1x64xf32>
    %138 = vector.broadcast %137 : vector<1x64xf32> to vector<8x64xf32>
    %139 = arith.mulf %77, %138 : vector<8x64xf32>
    %140 = math.exp %139 : vector<8x64xf32>
    %c6 = arith.constant 6 : index
    %c0_61 = arith.constant 0 : index
    %141 = tpu.strided_load %arg14[%c6, %c0_61] {strides = array<i32: 16, 1>} : memref<128x64xf32, #tpu.memory_space<vmem>>, vector<8x64xf32>
    tpu.strided_store %arg14[%c6, %c0_61], %140 {strides = array<i32: 16, 1>} : memref<128x64xf32, #tpu.memory_space<vmem>>, vector<8x64xf32>
    %142 = vector.extract_strided_slice %59 {offsets = [0, 6], sizes = [8, 1], strides = [1, 1]} : vector<8x16xf32> to vector<8x1xf32>
    %143 = vector.broadcast %142 : vector<8x1xf32> to vector<8x64xf32>
    %144 = arith.mulf %143, %82 : vector<8x64xf32>
    %c6_62 = arith.constant 6 : index
    %c0_63 = arith.constant 0 : index
    %145 = tpu.strided_load %arg15[%c6_62, %c0_63] {strides = array<i32: 16, 1>} : memref<128x64xf32, #tpu.memory_space<vmem>>, vector<8x64xf32>
    tpu.strided_store %arg15[%c6_62, %c0_63], %144 {strides = array<i32: 16, 1>} : memref<128x64xf32, #tpu.memory_space<vmem>>, vector<8x64xf32>
    %146 = vector.extract_strided_slice %81 {offsets = [7, 0], sizes = [1, 64], strides = [1, 1]} : vector<16x64xf32> to vector<1x64xf32>
    %147 = vector.broadcast %146 : vector<1x64xf32> to vector<8x64xf32>
    %148 = arith.mulf %77, %147 : vector<8x64xf32>
    %149 = math.exp %148 : vector<8x64xf32>
    %c7 = arith.constant 7 : index
    %c0_64 = arith.constant 0 : index
    %150 = tpu.strided_load %arg14[%c7, %c0_64] {strides = array<i32: 16, 1>} : memref<128x64xf32, #tpu.memory_space<vmem>>, vector<8x64xf32>
    tpu.strided_store %arg14[%c7, %c0_64], %149 {strides = array<i32: 16, 1>} : memref<128x64xf32, #tpu.memory_space<vmem>>, vector<8x64xf32>
    %151 = vector.extract_strided_slice %59 {offsets = [0, 7], sizes = [8, 1], strides = [1, 1]} : vector<8x16xf32> to vector<8x1xf32>
    %152 = vector.broadcast %151 : vector<8x1xf32> to vector<8x64xf32>
    %153 = arith.mulf %152, %82 : vector<8x64xf32>
    %c7_65 = arith.constant 7 : index
    %c0_66 = arith.constant 0 : index
    %154 = tpu.strided_load %arg15[%c7_65, %c0_66] {strides = array<i32: 16, 1>} : memref<128x64xf32, #tpu.memory_space<vmem>>, vector<8x64xf32>
    tpu.strided_store %arg15[%c7_65, %c0_66], %153 {strides = array<i32: 16, 1>} : memref<128x64xf32, #tpu.memory_space<vmem>>, vector<8x64xf32>
    %155 = vector.extract_strided_slice %81 {offsets = [8, 0], sizes = [1, 64], strides = [1, 1]} : vector<16x64xf32> to vector<1x64xf32>
    %156 = vector.broadcast %155 : vector<1x64xf32> to vector<8x64xf32>
    %157 = arith.mulf %77, %156 : vector<8x64xf32>
    %158 = math.exp %157 : vector<8x64xf32>
    %c8 = arith.constant 8 : index
    %c0_67 = arith.constant 0 : index
    %159 = tpu.strided_load %arg14[%c8, %c0_67] {strides = array<i32: 16, 1>} : memref<128x64xf32, #tpu.memory_space<vmem>>, vector<8x64xf32>
    tpu.strided_store %arg14[%c8, %c0_67], %158 {strides = array<i32: 16, 1>} : memref<128x64xf32, #tpu.memory_space<vmem>>, vector<8x64xf32>
    %160 = vector.extract_strided_slice %59 {offsets = [0, 8], sizes = [8, 1], strides = [1, 1]} : vector<8x16xf32> to vector<8x1xf32>
    %161 = vector.broadcast %160 : vector<8x1xf32> to vector<8x64xf32>
    %162 = arith.mulf %161, %82 : vector<8x64xf32>
    %c8_68 = arith.constant 8 : index
    %c0_69 = arith.constant 0 : index
    %163 = tpu.strided_load %arg15[%c8_68, %c0_69] {strides = array<i32: 16, 1>} : memref<128x64xf32, #tpu.memory_space<vmem>>, vector<8x64xf32>
    tpu.strided_store %arg15[%c8_68, %c0_69], %162 {strides = array<i32: 16, 1>} : memref<128x64xf32, #tpu.memory_space<vmem>>, vector<8x64xf32>
    %164 = vector.extract_strided_slice %81 {offsets = [9, 0], sizes = [1, 64], strides = [1, 1]} : vector<16x64xf32> to vector<1x64xf32>
    %165 = vector.broadcast %164 : vector<1x64xf32> to vector<8x64xf32>
    %166 = arith.mulf %77, %165 : vector<8x64xf32>
    %167 = math.exp %166 : vector<8x64xf32>
    %c9 = arith.constant 9 : index
    %c0_70 = arith.constant 0 : index
    %168 = tpu.strided_load %arg14[%c9, %c0_70] {strides = array<i32: 16, 1>} : memref<128x64xf32, #tpu.memory_space<vmem>>, vector<8x64xf32>
    tpu.strided_store %arg14[%c9, %c0_70], %167 {strides = array<i32: 16, 1>} : memref<128x64xf32, #tpu.memory_space<vmem>>, vector<8x64xf32>
    %169 = vector.extract_strided_slice %59 {offsets = [0, 9], sizes = [8, 1], strides = [1, 1]} : vector<8x16xf32> to vector<8x1xf32>
    %170 = vector.broadcast %169 : vector<8x1xf32> to vector<8x64xf32>
    %171 = arith.mulf %170, %82 : vector<8x64xf32>
    %c9_71 = arith.constant 9 : index
    %c0_72 = arith.constant 0 : index
    %172 = tpu.strided_load %arg15[%c9_71, %c0_72] {strides = array<i32: 16, 1>} : memref<128x64xf32, #tpu.memory_space<vmem>>, vector<8x64xf32>
    tpu.strided_store %arg15[%c9_71, %c0_72], %171 {strides = array<i32: 16, 1>} : memref<128x64xf32, #tpu.memory_space<vmem>>, vector<8x64xf32>
    %173 = vector.extract_strided_slice %81 {offsets = [10, 0], sizes = [1, 64], strides = [1, 1]} : vector<16x64xf32> to vector<1x64xf32>
    %174 = vector.broadcast %173 : vector<1x64xf32> to vector<8x64xf32>
    %175 = arith.mulf %77, %174 : vector<8x64xf32>
    %176 = math.exp %175 : vector<8x64xf32>
    %c10 = arith.constant 10 : index
    %c0_73 = arith.constant 0 : index
    %177 = tpu.strided_load %arg14[%c10, %c0_73] {strides = array<i32: 16, 1>} : memref<128x64xf32, #tpu.memory_space<vmem>>, vector<8x64xf32>
    tpu.strided_store %arg14[%c10, %c0_73], %176 {strides = array<i32: 16, 1>} : memref<128x64xf32, #tpu.memory_space<vmem>>, vector<8x64xf32>
    %178 = vector.extract_strided_slice %59 {offsets = [0, 10], sizes = [8, 1], strides = [1, 1]} : vector<8x16xf32> to vector<8x1xf32>
    %179 = vector.broadcast %178 : vector<8x1xf32> to vector<8x64xf32>
    %180 = arith.mulf %179, %82 : vector<8x64xf32>
    %c10_74 = arith.constant 10 : index
    %c0_75 = arith.constant 0 : index
    %181 = tpu.strided_load %arg15[%c10_74, %c0_75] {strides = array<i32: 16, 1>} : memref<128x64xf32, #tpu.memory_space<vmem>>, vector<8x64xf32>
    tpu.strided_store %arg15[%c10_74, %c0_75], %180 {strides = array<i32: 16, 1>} : memref<128x64xf32, #tpu.memory_space<vmem>>, vector<8x64xf32>
    %182 = vector.extract_strided_slice %81 {offsets = [11, 0], sizes = [1, 64], strides = [1, 1]} : vector<16x64xf32> to vector<1x64xf32>
    %183 = vector.broadcast %182 : vector<1x64xf32> to vector<8x64xf32>
    %184 = arith.mulf %77, %183 : vector<8x64xf32>
    %185 = math.exp %184 : vector<8x64xf32>
    %c11 = arith.constant 11 : index
    %c0_76 = arith.constant 0 : index
    %186 = tpu.strided_load %arg14[%c11, %c0_76] {strides = array<i32: 16, 1>} : memref<128x64xf32, #tpu.memory_space<vmem>>, vector<8x64xf32>
    tpu.strided_store %arg14[%c11, %c0_76], %185 {strides = array<i32: 16, 1>} : memref<128x64xf32, #tpu.memory_space<vmem>>, vector<8x64xf32>
    %187 = vector.extract_strided_slice %59 {offsets = [0, 11], sizes = [8, 1], strides = [1, 1]} : vector<8x16xf32> to vector<8x1xf32>
    %188 = vector.broadcast %187 : vector<8x1xf32> to vector<8x64xf32>
    %189 = arith.mulf %188, %82 : vector<8x64xf32>
    %c11_77 = arith.constant 11 : index
    %c0_78 = arith.constant 0 : index
    %190 = tpu.strided_load %arg15[%c11_77, %c0_78] {strides = array<i32: 16, 1>} : memref<128x64xf32, #tpu.memory_space<vmem>>, vector<8x64xf32>
    tpu.strided_store %arg15[%c11_77, %c0_78], %189 {strides = array<i32: 16, 1>} : memref<128x64xf32, #tpu.memory_space<vmem>>, vector<8x64xf32>
    %191 = vector.extract_strided_slice %81 {offsets = [12, 0], sizes = [1, 64], strides = [1, 1]} : vector<16x64xf32> to vector<1x64xf32>
    %192 = vector.broadcast %191 : vector<1x64xf32> to vector<8x64xf32>
    %193 = arith.mulf %77, %192 : vector<8x64xf32>
    %194 = math.exp %193 : vector<8x64xf32>
    %c12 = arith.constant 12 : index
    %c0_79 = arith.constant 0 : index
    %195 = tpu.strided_load %arg14[%c12, %c0_79] {strides = array<i32: 16, 1>} : memref<128x64xf32, #tpu.memory_space<vmem>>, vector<8x64xf32>
    tpu.strided_store %arg14[%c12, %c0_79], %194 {strides = array<i32: 16, 1>} : memref<128x64xf32, #tpu.memory_space<vmem>>, vector<8x64xf32>
    %196 = vector.extract_strided_slice %59 {offsets = [0, 12], sizes = [8, 1], strides = [1, 1]} : vector<8x16xf32> to vector<8x1xf32>
    %197 = vector.broadcast %196 : vector<8x1xf32> to vector<8x64xf32>
    %198 = arith.mulf %197, %82 : vector<8x64xf32>
    %c12_80 = arith.constant 12 : index
    %c0_81 = arith.constant 0 : index
    %199 = tpu.strided_load %arg15[%c12_80, %c0_81] {strides = array<i32: 16, 1>} : memref<128x64xf32, #tpu.memory_space<vmem>>, vector<8x64xf32>
    tpu.strided_store %arg15[%c12_80, %c0_81], %198 {strides = array<i32: 16, 1>} : memref<128x64xf32, #tpu.memory_space<vmem>>, vector<8x64xf32>
    %200 = vector.extract_strided_slice %81 {offsets = [13, 0], sizes = [1, 64], strides = [1, 1]} : vector<16x64xf32> to vector<1x64xf32>
    %201 = vector.broadcast %200 : vector<1x64xf32> to vector<8x64xf32>
    %202 = arith.mulf %77, %201 : vector<8x64xf32>
    %203 = math.exp %202 : vector<8x64xf32>
    %c13 = arith.constant 13 : index
    %c0_82 = arith.constant 0 : index
    %204 = tpu.strided_load %arg14[%c13, %c0_82] {strides = array<i32: 16, 1>} : memref<128x64xf32, #tpu.memory_space<vmem>>, vector<8x64xf32>
    tpu.strided_store %arg14[%c13, %c0_82], %203 {strides = array<i32: 16, 1>} : memref<128x64xf32, #tpu.memory_space<vmem>>, vector<8x64xf32>
    %205 = vector.extract_strided_slice %59 {offsets = [0, 13], sizes = [8, 1], strides = [1, 1]} : vector<8x16xf32> to vector<8x1xf32>
    %206 = vector.broadcast %205 : vector<8x1xf32> to vector<8x64xf32>
    %207 = arith.mulf %206, %82 : vector<8x64xf32>
    %c13_83 = arith.constant 13 : index
    %c0_84 = arith.constant 0 : index
    %208 = tpu.strided_load %arg15[%c13_83, %c0_84] {strides = array<i32: 16, 1>} : memref<128x64xf32, #tpu.memory_space<vmem>>, vector<8x64xf32>
    tpu.strided_store %arg15[%c13_83, %c0_84], %207 {strides = array<i32: 16, 1>} : memref<128x64xf32, #tpu.memory_space<vmem>>, vector<8x64xf32>
    %209 = vector.extract_strided_slice %81 {offsets = [14, 0], sizes = [1, 64], strides = [1, 1]} : vector<16x64xf32> to vector<1x64xf32>
    %210 = vector.broadcast %209 : vector<1x64xf32> to vector<8x64xf32>
    %211 = arith.mulf %77, %210 : vector<8x64xf32>
    %212 = math.exp %211 : vector<8x64xf32>
    %c14 = arith.constant 14 : index
    %c0_85 = arith.constant 0 : index
    %213 = tpu.strided_load %arg14[%c14, %c0_85] {strides = array<i32: 16, 1>} : memref<128x64xf32, #tpu.memory_space<vmem>>, vector<8x64xf32>
    tpu.strided_store %arg14[%c14, %c0_85], %212 {strides = array<i32: 16, 1>} : memref<128x64xf32, #tpu.memory_space<vmem>>, vector<8x64xf32>
    %214 = vector.extract_strided_slice %59 {offsets = [0, 14], sizes = [8, 1], strides = [1, 1]} : vector<8x16xf32> to vector<8x1xf32>
    %215 = vector.broadcast %214 : vector<8x1xf32> to vector<8x64xf32>
    %216 = arith.mulf %215, %82 : vector<8x64xf32>
    %c14_86 = arith.constant 14 : index
    %c0_87 = arith.constant 0 : index
    %217 = tpu.strided_load %arg15[%c14_86, %c0_87] {strides = array<i32: 16, 1>} : memref<128x64xf32, #tpu.memory_space<vmem>>, vector<8x64xf32>
    tpu.strided_store %arg15[%c14_86, %c0_87], %216 {strides = array<i32: 16, 1>} : memref<128x64xf32, #tpu.memory_space<vmem>>, vector<8x64xf32>
    %218 = vector.extract_strided_slice %81 {offsets = [15, 0], sizes = [1, 64], strides = [1, 1]} : vector<16x64xf32> to vector<1x64xf32>
    %219 = vector.broadcast %218 : vector<1x64xf32> to vector<8x64xf32>
    %220 = arith.mulf %77, %219 : vector<8x64xf32>
    %221 = math.exp %220 : vector<8x64xf32>
    %c15 = arith.constant 15 : index
    %c0_88 = arith.constant 0 : index
    %222 = tpu.strided_load %arg14[%c15, %c0_88] {strides = array<i32: 16, 1>} : memref<128x64xf32, #tpu.memory_space<vmem>>, vector<8x64xf32>
    tpu.strided_store %arg14[%c15, %c0_88], %221 {strides = array<i32: 16, 1>} : memref<128x64xf32, #tpu.memory_space<vmem>>, vector<8x64xf32>
    %223 = vector.extract_strided_slice %59 {offsets = [0, 15], sizes = [8, 1], strides = [1, 1]} : vector<8x16xf32> to vector<8x1xf32>
    %224 = vector.broadcast %223 : vector<8x1xf32> to vector<8x64xf32>
    %225 = arith.mulf %224, %82 : vector<8x64xf32>
    %c15_89 = arith.constant 15 : index
    %c0_90 = arith.constant 0 : index
    %226 = tpu.strided_load %arg15[%c15_89, %c0_90] {strides = array<i32: 16, 1>} : memref<128x64xf32, #tpu.memory_space<vmem>>, vector<8x64xf32>
    tpu.strided_store %arg15[%c15_89, %c0_90], %225 {strides = array<i32: 16, 1>} : memref<128x64xf32, #tpu.memory_space<vmem>>, vector<8x64xf32>
    %cst_91 = arith.constant 0.000000e+00 : f32
    %227 = vector.broadcast %cst_91 : f32 to vector<16x64xf32>
    %c0_i32 = arith.constant 0 : i32
    %c16_i32 = arith.constant 16 : i32
    %228 = arith.muli %c0_i32, %c16_i32 : i32
    %229 = tpu.assume_multiple %228, 16 : i32
    %230 = arith.index_cast %229 : i32 to index
    %c0_92 = arith.constant 0 : index
    %231 = vector.load %arg14[%230, %c0_92] : memref<128x64xf32, #tpu.memory_space<vmem>>, vector<16x64xf32>
    %232 = arith.mulf %231, %227 : vector<16x64xf32>
    %233 = arith.index_cast %229 : i32 to index
    %c0_93 = arith.constant 0 : index
    %234 = vector.load %arg15[%233, %c0_93] : memref<128x64xf32, #tpu.memory_space<vmem>>, vector<16x64xf32>
    %235 = arith.addf %232, %234 : vector<16x64xf32>
    %236 = arith.index_cast %229 : i32 to index
    %c0_94 = arith.constant 0 : index
    %237 = vector.load %arg16[%236, %c0_94] : memref<128x64xf32, #tpu.memory_space<vmem>>, vector<16x64xf32>
    tpu.vector_store %arg16[%236, %c0_94], %235 {strides = array<i32>} : memref<128x64xf32, #tpu.memory_space<vmem>>, vector<16x64xf32>,
    %c1_i32 = arith.constant 1 : i32
    %c16_i32_95 = arith.constant 16 : i32
    %238 = arith.muli %c1_i32, %c16_i32_95 : i32
    %239 = tpu.assume_multiple %238, 16 : i32
    %240 = arith.index_cast %239 : i32 to index
    %c0_96 = arith.constant 0 : index
    %241 = vector.load %arg14[%240, %c0_96] : memref<128x64xf32, #tpu.memory_space<vmem>>, vector<16x64xf32>
    %242 = arith.mulf %241, %235 : vector<16x64xf32>
    %243 = arith.index_cast %239 : i32 to index
    %c0_97 = arith.constant 0 : index
    %244 = vector.load %arg15[%243, %c0_97] : memref<128x64xf32, #tpu.memory_space<vmem>>, vector<16x64xf32>
    %245 = arith.addf %242, %244 : vector<16x64xf32>
    %246 = arith.index_cast %239 : i32 to index
    %c0_98 = arith.constant 0 : index
    %247 = vector.load %arg16[%246, %c0_98] : memref<128x64xf32, #tpu.memory_space<vmem>>, vector<16x64xf32>
    tpu.vector_store %arg16[%246, %c0_98], %245 {strides = array<i32>} : memref<128x64xf32, #tpu.memory_space<vmem>>, vector<16x64xf32>,
    %c2_i32 = arith.constant 2 : i32
    %c16_i32_99 = arith.constant 16 : i32
    %248 = arith.muli %c2_i32, %c16_i32_99 : i32
    %249 = tpu.assume_multiple %248, 16 : i32
    %250 = arith.index_cast %249 : i32 to index
    %c0_100 = arith.constant 0 : index
    %251 = vector.load %arg14[%250, %c0_100] : memref<128x64xf32, #tpu.memory_space<vmem>>, vector<16x64xf32>
    %252 = arith.mulf %251, %245 : vector<16x64xf32>
    %253 = arith.index_cast %249 : i32 to index
    %c0_101 = arith.constant 0 : index
    %254 = vector.load %arg15[%253, %c0_101] : memref<128x64xf32, #tpu.memory_space<vmem>>, vector<16x64xf32>
    %255 = arith.addf %252, %254 : vector<16x64xf32>
    %256 = arith.index_cast %249 : i32 to index
    %c0_102 = arith.constant 0 : index
    %257 = vector.load %arg16[%256, %c0_102] : memref<128x64xf32, #tpu.memory_space<vmem>>, vector<16x64xf32>
    tpu.vector_store %arg16[%256, %c0_102], %255 {strides = array<i32>} : memref<128x64xf32, #tpu.memory_space<vmem>>, vector<16x64xf32>,
    %c3_i32 = arith.constant 3 : i32
    %c16_i32_103 = arith.constant 16 : i32
    %258 = arith.muli %c3_i32, %c16_i32_103 : i32
    %259 = tpu.assume_multiple %258, 16 : i32
    %260 = arith.index_cast %259 : i32 to index
    %c0_104 = arith.constant 0 : index
    %261 = vector.load %arg14[%260, %c0_104] : memref<128x64xf32, #tpu.memory_space<vmem>>, vector<16x64xf32>
    %262 = arith.mulf %261, %255 : vector<16x64xf32>
    %263 = arith.index_cast %259 : i32 to index
    %c0_105 = arith.constant 0 : index
    %264 = vector.load %arg15[%263, %c0_105] : memref<128x64xf32, #tpu.memory_space<vmem>>, vector<16x64xf32>
    %265 = arith.addf %262, %264 : vector<16x64xf32>
    %266 = arith.index_cast %259 : i32 to index
    %c0_106 = arith.constant 0 : index
    %267 = vector.load %arg16[%266, %c0_106] : memref<128x64xf32, #tpu.memory_space<vmem>>, vector<16x64xf32>
    tpu.vector_store %arg16[%266, %c0_106], %265 {strides = array<i32>} : memref<128x64xf32, #tpu.memory_space<vmem>>, vector<16x64xf32>,
    %c4_i32 = arith.constant 4 : i32
    %c16_i32_107 = arith.constant 16 : i32
    %268 = arith.muli %c4_i32, %c16_i32_107 : i32
    %269 = tpu.assume_multiple %268, 16 : i32
    %270 = arith.index_cast %269 : i32 to index
    %c0_108 = arith.constant 0 : index
    %271 = vector.load %arg14[%270, %c0_108] : memref<128x64xf32, #tpu.memory_space<vmem>>, vector<16x64xf32>
    %272 = arith.mulf %271, %265 : vector<16x64xf32>
    %273 = arith.index_cast %269 : i32 to index
    %c0_109 = arith.constant 0 : index
    %274 = vector.load %arg15[%273, %c0_109] : memref<128x64xf32, #tpu.memory_space<vmem>>, vector<16x64xf32>
    %275 = arith.addf %272, %274 : vector<16x64xf32>
    %276 = arith.index_cast %269 : i32 to index
    %c0_110 = arith.constant 0 : index
    %277 = vector.load %arg16[%276, %c0_110] : memref<128x64xf32, #tpu.memory_space<vmem>>, vector<16x64xf32>
    tpu.vector_store %arg16[%276, %c0_110], %275 {strides = array<i32>} : memref<128x64xf32, #tpu.memory_space<vmem>>, vector<16x64xf32>,
    %c5_i32 = arith.constant 5 : i32
    %c16_i32_111 = arith.constant 16 : i32
    %278 = arith.muli %c5_i32, %c16_i32_111 : i32
    %279 = tpu.assume_multiple %278, 16 : i32
    %280 = arith.index_cast %279 : i32 to index
    %c0_112 = arith.constant 0 : index
    %281 = vector.load %arg14[%280, %c0_112] : memref<128x64xf32, #tpu.memory_space<vmem>>, vector<16x64xf32>
    %282 = arith.mulf %281, %275 : vector<16x64xf32>
    %283 = arith.index_cast %279 : i32 to index
    %c0_113 = arith.constant 0 : index
    %284 = vector.load %arg15[%283, %c0_113] : memref<128x64xf32, #tpu.memory_space<vmem>>, vector<16x64xf32>
    %285 = arith.addf %282, %284 : vector<16x64xf32>
    %286 = arith.index_cast %279 : i32 to index
    %c0_114 = arith.constant 0 : index
    %287 = vector.load %arg16[%286, %c0_114] : memref<128x64xf32, #tpu.memory_space<vmem>>, vector<16x64xf32>
    tpu.vector_store %arg16[%286, %c0_114], %285 {strides = array<i32>} : memref<128x64xf32, #tpu.memory_space<vmem>>, vector<16x64xf32>,
    %c6_i32 = arith.constant 6 : i32
    %c16_i32_115 = arith.constant 16 : i32
    %288 = arith.muli %c6_i32, %c16_i32_115 : i32
    %289 = tpu.assume_multiple %288, 16 : i32
    %290 = arith.index_cast %289 : i32 to index
    %c0_116 = arith.constant 0 : index
    %291 = vector.load %arg14[%290, %c0_116] : memref<128x64xf32, #tpu.memory_space<vmem>>, vector<16x64xf32>
    %292 = arith.mulf %291, %285 : vector<16x64xf32>
    %293 = arith.index_cast %289 : i32 to index
    %c0_117 = arith.constant 0 : index
    %294 = vector.load %arg15[%293, %c0_117] : memref<128x64xf32, #tpu.memory_space<vmem>>, vector<16x64xf32>
    %295 = arith.addf %292, %294 : vector<16x64xf32>
    %296 = arith.index_cast %289 : i32 to index
    %c0_118 = arith.constant 0 : index
    %297 = vector.load %arg16[%296, %c0_118] : memref<128x64xf32, #tpu.memory_space<vmem>>, vector<16x64xf32>
    tpu.vector_store %arg16[%296, %c0_118], %295 {strides = array<i32>} : memref<128x64xf32, #tpu.memory_space<vmem>>, vector<16x64xf32>,
    %c7_i32 = arith.constant 7 : i32
    %c16_i32_119 = arith.constant 16 : i32
    %298 = arith.muli %c7_i32, %c16_i32_119 : i32
    %299 = tpu.assume_multiple %298, 16 : i32
    %300 = arith.index_cast %299 : i32 to index
    %c0_120 = arith.constant 0 : index
    %301 = vector.load %arg14[%300, %c0_120] : memref<128x64xf32, #tpu.memory_space<vmem>>, vector<16x64xf32>
    %302 = arith.mulf %301, %295 : vector<16x64xf32>
    %303 = arith.index_cast %299 : i32 to index
    %c0_121 = arith.constant 0 : index
    %304 = vector.load %arg15[%303, %c0_121] : memref<128x64xf32, #tpu.memory_space<vmem>>, vector<16x64xf32>
    %305 = arith.addf %302, %304 : vector<16x64xf32>
    %306 = arith.index_cast %299 : i32 to index
    %c0_122 = arith.constant 0 : index
    %307 = vector.load %arg16[%306, %c0_122] : memref<128x64xf32, #tpu.memory_space<vmem>>, vector<16x64xf32>
    tpu.vector_store %arg16[%306, %c0_122], %305 {strides = array<i32>} : memref<128x64xf32, #tpu.memory_space<vmem>>, vector<16x64xf32>,
    %c8_i32 = arith.constant 8 : i32
    %c0_123 = arith.constant 0 : index
    %c0_124 = arith.constant 0 : index
    %308 = vector.load %arg9[%c0_123, %c0_124] : memref<1x64xf32, #tpu.memory_space<vmem>>, vector<1x64xf32>
    %309 = vector.broadcast %308 : vector<1x64xf32> to vector<8x64xf32>
    %310 = arith.mulf %55, %309 : vector<8x64xf32>
    %311 = vector.extract_strided_slice %60 {offsets = [0, 0], sizes = [8, 1], strides = [1, 1]} : vector<8x16xf32> to vector<8x1xf32>
    %c0_125 = arith.constant 0 : index
    %c0_126 = arith.constant 0 : index
    %312 = tpu.strided_load %arg16[%c0_125, %c0_126] {strides = array<i32: 16, 1>} : memref<128x64xf32, #tpu.memory_space<vmem>>, vector<8x64xf32>
    %313 = vector.broadcast %311 : vector<8x1xf32> to vector<8x64xf32>
    %314 = arith.mulf %313, %312 : vector<8x64xf32>
    %315 = arith.addf %310, %314 : vector<8x64xf32>
    %316 = vector.extract_strided_slice %60 {offsets = [0, 1], sizes = [8, 1], strides = [1, 1]} : vector<8x16xf32> to vector<8x1xf32>
    %c1_127 = arith.constant 1 : index
    %c0_128 = arith.constant 0 : index
    %317 = tpu.strided_load %arg16[%c1_127, %c0_128] {strides = array<i32: 16, 1>} : memref<128x64xf32, #tpu.memory_space<vmem>>, vector<8x64xf32>
    %318 = vector.broadcast %316 : vector<8x1xf32> to vector<8x64xf32>
    %319 = arith.mulf %318, %317 : vector<8x64xf32>
    %320 = arith.addf %315, %319 : vector<8x64xf32>
    %321 = vector.extract_strided_slice %60 {offsets = [0, 2], sizes = [8, 1], strides = [1, 1]} : vector<8x16xf32> to vector<8x1xf32>
    %c2_129 = arith.constant 2 : index
    %c0_130 = arith.constant 0 : index
    %322 = tpu.strided_load %arg16[%c2_129, %c0_130] {strides = array<i32: 16, 1>} : memref<128x64xf32, #tpu.memory_space<vmem>>, vector<8x64xf32>
    %323 = vector.broadcast %321 : vector<8x1xf32> to vector<8x64xf32>
    %324 = arith.mulf %323, %322 : vector<8x64xf32>
    %325 = arith.addf %320, %324 : vector<8x64xf32>
    %326 = vector.extract_strided_slice %60 {offsets = [0, 3], sizes = [8, 1], strides = [1, 1]} : vector<8x16xf32> to vector<8x1xf32>
    %c3_131 = arith.constant 3 : index
    %c0_132 = arith.constant 0 : index
    %327 = tpu.strided_load %arg16[%c3_131, %c0_132] {strides = array<i32: 16, 1>} : memref<128x64xf32, #tpu.memory_space<vmem>>, vector<8x64xf32>
    %328 = vector.broadcast %326 : vector<8x1xf32> to vector<8x64xf32>
    %329 = arith.mulf %328, %327 : vector<8x64xf32>
    %330 = arith.addf %325, %329 : vector<8x64xf32>
    %331 = vector.extract_strided_slice %60 {offsets = [0, 4], sizes = [8, 1], strides = [1, 1]} : vector<8x16xf32> to vector<8x1xf32>
    %c4_133 = arith.constant 4 : index
    %c0_134 = arith.constant 0 : index
    %332 = tpu.strided_load %arg16[%c4_133, %c0_134] {strides = array<i32: 16, 1>} : memref<128x64xf32, #tpu.memory_space<vmem>>, vector<8x64xf32>
    %333 = vector.broadcast %331 : vector<8x1xf32> to vector<8x64xf32>
    %334 = arith.mulf %333, %332 : vector<8x64xf32>
    %335 = arith.addf %330, %334 : vector<8x64xf32>
    %336 = vector.extract_strided_slice %60 {offsets = [0, 5], sizes = [8, 1], strides = [1, 1]} : vector<8x16xf32> to vector<8x1xf32>
    %c5_135 = arith.constant 5 : index
    %c0_136 = arith.constant 0 : index
    %337 = tpu.strided_load %arg16[%c5_135, %c0_136] {strides = array<i32: 16, 1>} : memref<128x64xf32, #tpu.memory_space<vmem>>, vector<8x64xf32>
    %338 = vector.broadcast %336 : vector<8x1xf32> to vector<8x64xf32>
    %339 = arith.mulf %338, %337 : vector<8x64xf32>
    %340 = arith.addf %335, %339 : vector<8x64xf32>
    %341 = vector.extract_strided_slice %60 {offsets = [0, 6], sizes = [8, 1], strides = [1, 1]} : vector<8x16xf32> to vector<8x1xf32>
    %c6_137 = arith.constant 6 : index
    %c0_138 = arith.constant 0 : index
    %342 = tpu.strided_load %arg16[%c6_137, %c0_138] {strides = array<i32: 16, 1>} : memref<128x64xf32, #tpu.memory_space<vmem>>, vector<8x64xf32>
    %343 = vector.broadcast %341 : vector<8x1xf32> to vector<8x64xf32>
    %344 = arith.mulf %343, %342 : vector<8x64xf32>
    %345 = arith.addf %340, %344 : vector<8x64xf32>
    %346 = vector.extract_strided_slice %60 {offsets = [0, 7], sizes = [8, 1], strides = [1, 1]} : vector<8x16xf32> to vector<8x1xf32>
    %c7_139 = arith.constant 7 : index
    %c0_140 = arith.constant 0 : index
    %347 = tpu.strided_load %arg16[%c7_139, %c0_140] {strides = array<i32: 16, 1>} : memref<128x64xf32, #tpu.memory_space<vmem>>, vector<8x64xf32>
    %348 = vector.broadcast %346 : vector<8x1xf32> to vector<8x64xf32>
    %349 = arith.mulf %348, %347 : vector<8x64xf32>
    %350 = arith.addf %345, %349 : vector<8x64xf32>
    %351 = vector.extract_strided_slice %60 {offsets = [0, 8], sizes = [8, 1], strides = [1, 1]} : vector<8x16xf32> to vector<8x1xf32>
    %c8_141 = arith.constant 8 : index
    %c0_142 = arith.constant 0 : index
    %352 = tpu.strided_load %arg16[%c8_141, %c0_142] {strides = array<i32: 16, 1>} : memref<128x64xf32, #tpu.memory_space<vmem>>, vector<8x64xf32>
    %353 = vector.broadcast %351 : vector<8x1xf32> to vector<8x64xf32>
    %354 = arith.mulf %353, %352 : vector<8x64xf32>
    %355 = arith.addf %350, %354 : vector<8x64xf32>
    %356 = vector.extract_strided_slice %60 {offsets = [0, 9], sizes = [8, 1], strides = [1, 1]} : vector<8x16xf32> to vector<8x1xf32>
    %c9_143 = arith.constant 9 : index
    %c0_144 = arith.constant 0 : index
    %357 = tpu.strided_load %arg16[%c9_143, %c0_144] {strides = array<i32: 16, 1>} : memref<128x64xf32, #tpu.memory_space<vmem>>, vector<8x64xf32>
    %358 = vector.broadcast %356 : vector<8x1xf32> to vector<8x64xf32>
    %359 = arith.mulf %358, %357 : vector<8x64xf32>
    %360 = arith.addf %355, %359 : vector<8x64xf32>
    %361 = vector.extract_strided_slice %60 {offsets = [0, 10], sizes = [8, 1], strides = [1, 1]} : vector<8x16xf32> to vector<8x1xf32>
    %c10_145 = arith.constant 10 : index
    %c0_146 = arith.constant 0 : index
    %362 = tpu.strided_load %arg16[%c10_145, %c0_146] {strides = array<i32: 16, 1>} : memref<128x64xf32, #tpu.memory_space<vmem>>, vector<8x64xf32>
    %363 = vector.broadcast %361 : vector<8x1xf32> to vector<8x64xf32>
    %364 = arith.mulf %363, %362 : vector<8x64xf32>
    %365 = arith.addf %360, %364 : vector<8x64xf32>
    %366 = vector.extract_strided_slice %60 {offsets = [0, 11], sizes = [8, 1], strides = [1, 1]} : vector<8x16xf32> to vector<8x1xf32>
    %c11_147 = arith.constant 11 : index
    %c0_148 = arith.constant 0 : index
    %367 = tpu.strided_load %arg16[%c11_147, %c0_148] {strides = array<i32: 16, 1>} : memref<128x64xf32, #tpu.memory_space<vmem>>, vector<8x64xf32>
    %368 = vector.broadcast %366 : vector<8x1xf32> to vector<8x64xf32>
    %369 = arith.mulf %368, %367 : vector<8x64xf32>
    %370 = arith.addf %365, %369 : vector<8x64xf32>
    %371 = vector.extract_strided_slice %60 {offsets = [0, 12], sizes = [8, 1], strides = [1, 1]} : vector<8x16xf32> to vector<8x1xf32>
    %c12_149 = arith.constant 12 : index
    %c0_150 = arith.constant 0 : index
    %372 = tpu.strided_load %arg16[%c12_149, %c0_150] {strides = array<i32: 16, 1>} : memref<128x64xf32, #tpu.memory_space<vmem>>, vector<8x64xf32>
    %373 = vector.broadcast %371 : vector<8x1xf32> to vector<8x64xf32>
    %374 = arith.mulf %373, %372 : vector<8x64xf32>
    %375 = arith.addf %370, %374 : vector<8x64xf32>
    %376 = vector.extract_strided_slice %60 {offsets = [0, 13], sizes = [8, 1], strides = [1, 1]} : vector<8x16xf32> to vector<8x1xf32>
    %c13_151 = arith.constant 13 : index
    %c0_152 = arith.constant 0 : index
    %377 = tpu.strided_load %arg16[%c13_151, %c0_152] {strides = array<i32: 16, 1>} : memref<128x64xf32, #tpu.memory_space<vmem>>, vector<8x64xf32>
    %378 = vector.broadcast %376 : vector<8x1xf32> to vector<8x64xf32>
    %379 = arith.mulf %378, %377 : vector<8x64xf32>
    %380 = arith.addf %375, %379 : vector<8x64xf32>
    %381 = vector.extract_strided_slice %60 {offsets = [0, 14], sizes = [8, 1], strides = [1, 1]} : vector<8x16xf32> to vector<8x1xf32>
    %c14_153 = arith.constant 14 : index
    %c0_154 = arith.constant 0 : index
    %382 = tpu.strided_load %arg16[%c14_153, %c0_154] {strides = array<i32: 16, 1>} : memref<128x64xf32, #tpu.memory_space<vmem>>, vector<8x64xf32>
    %383 = vector.broadcast %381 : vector<8x1xf32> to vector<8x64xf32>
    %384 = arith.mulf %383, %382 : vector<8x64xf32>
    %385 = arith.addf %380, %384 : vector<8x64xf32>
    %386 = vector.extract_strided_slice %60 {offsets = [0, 15], sizes = [8, 1], strides = [1, 1]} : vector<8x16xf32> to vector<8x1xf32>
    %c15_155 = arith.constant 15 : index
    %c0_156 = arith.constant 0 : index
    %387 = tpu.strided_load %arg16[%c15_155, %c0_156] {strides = array<i32: 16, 1>} : memref<128x64xf32, #tpu.memory_space<vmem>>, vector<8x64xf32>
    %388 = vector.broadcast %386 : vector<8x1xf32> to vector<8x64xf32>
    %389 = arith.mulf %388, %387 : vector<8x64xf32>
    %390 = arith.addf %385, %389 : vector<8x64xf32>
    %cst_157 = arith.constant 0.000000e+00 : f32
    %391 = vector.broadcast %cst_157 : f32 to vector<8x64xf32>
    %392 = arith.subf %391, %19 : vector<8x64xf32>
    %393 = math.exp %392 : vector<8x64xf32>
    %cst_158 = arith.constant 1.000000e+00 : f32
    %394 = vector.broadcast %cst_158 : f32 to vector<8x64xf32>
    %395 = arith.addf %394, %393 : vector<8x64xf32>
    %396 = tpu.reciprocal %395 {approx = true} : vector<8x64xf32> -> vector<8x64xf32>
    %397 = arith.mulf %19, %396 : vector<8x64xf32>
    %398 = arith.mulf %390, %397 : vector<8x64xf32>
    %399 = arith.truncf %398 : vector<8x64xf32> to vector<8x64xbf16>
    %c0_159 = arith.constant 0 : index
    %c0_160 = arith.constant 0 : index
    %400 = vector.load %arg11[%c0_159, %c0_160] : memref<64x32xbf16, #tpu.memory_space<vmem>>, vector<64x32xbf16>
    %cst_161 = arith.constant dense<0.000000e+00> : vector<8x32xf32>
    %401 = tpu.matmul %399, %400, %cst_161 {dimension_numbers = #tpu.dot_dimension_numbers<[1], [0], [0], [1], [0, 0, 1, 1], [], []>} : vector<8x64xbf16>, vector<64x32xbf16>, vector<8x32xf32> -> vector<8x32xf32>
    %402 = arith.addf %401, %1 : vector<8x32xf32>
    %c0_162 = arith.constant 0 : index
    %c0_163 = arith.constant 0 : index
    %c0_164 = arith.constant 0 : index
    %403 = vector.load %arg13[%c0_162, %c0_163, %c0_164] : memref<1x8x32xf32, #tpu.memory_space<vmem>>, vector<1x8x32xf32>
    %404 = vector.shape_cast %403 : vector<1x8x32xf32> to vector<8x32xf32>
    %405 = vector.shape_cast %402 : vector<8x32xf32> to vector<1x8x32xf32>
    tpu.vector_store %arg13[%c0_162, %c0_163, %c0_164], %405 {strides = array<i32>} : memref<1x8x32xf32, #tpu.memory_space<vmem>>, vector<1x8x32xf32>,
    return
  }
  func.func @transform_0(%arg0: i32) -> (i32, i32, i32) {
    %c0_i32 = arith.constant 0 : i32
    %c0_i32_0 = arith.constant 0 : i32
    %c0_i32_1 = arith.constant 0 : i32
    return %arg0, %c0_i32, %c0_i32_0 : i32, i32, i32
  }
  func.func @transform_1(%arg0: i32) -> (i32, i32) {
    %c0_i32 = arith.constant 0 : i32
    %c0_i32_0 = arith.constant 0 : i32
    %c0_i32_1 = arith.constant 0 : i32
    return %c0_i32, %c0_i32_0 : i32, i32
  }
  func.func @transform_2(%arg0: i32) -> (i32, i32) {
    %c0_i32 = arith.constant 0 : i32
    %c0_i32_0 = arith.constant 0 : i32
    %c0_i32_1 = arith.constant 0 : i32
    return %c0_i32, %c0_i32_0 : i32, i32
  }
  func.func @transform_3(%arg0: i32) -> (i32, i32) {
    %c0_i32 = arith.constant 0 : i32
    %c0_i32_0 = arith.constant 0 : i32
    %c0_i32_1 = arith.constant 0 : i32
    return %c0_i32, %c0_i32_0 : i32, i32
  }
  func.func @transform_4(%arg0: i32) -> (i32, i32) {
    %c0_i32 = arith.constant 0 : i32
    %c0_i32_0 = arith.constant 0 : i32
    %c0_i32_1 = arith.constant 0 : i32
    return %c0_i32, %c0_i32_0 : i32, i32
  }
  func.func @transform_5(%arg0: i32) -> (i32, i32) {
    %c0_i32 = arith.constant 0 : i32
    %c0_i32_0 = arith.constant 0 : i32
    %c0_i32_1 = arith.constant 0 : i32
    return %c0_i32, %c0_i32_0 : i32, i32
  }
  func.func @transform_6(%arg0: i32) -> (i32, i32) {
    %c0_i32 = arith.constant 0 : i32
    %c0_i32_0 = arith.constant 0 : i32
    %c0_i32_1 = arith.constant 0 : i32
    return %c0_i32, %c0_i32_0 : i32, i32
  }
  func.func @transform_7(%arg0: i32) -> (i32, i32) {
    %c0_i32 = arith.constant 0 : i32
    %c0_i32_0 = arith.constant 0 : i32
    %c0_i32_1 = arith.constant 0 : i32
    return %c0_i32, %c0_i32_0 : i32, i32
  }
  func.func @transform_8(%arg0: i32) -> (i32, i32) {
    %c0_i32 = arith.constant 0 : i32
    %c0_i32_0 = arith.constant 0 : i32
    %c0_i32_1 = arith.constant 0 : i32
    return %c0_i32, %c0_i32_0 : i32, i32
  }
  func.func @transform_9(%arg0: i32) -> (i32, i32) {
    %c0_i32 = arith.constant 0 : i32
    %c0_i32_0 = arith.constant 0 : i32
    %c0_i32_1 = arith.constant 0 : i32
    return %c0_i32, %c0_i32_0 : i32, i32
  }
  func.func @transform_10(%arg0: i32) -> (i32, i32) {
    %c0_i32 = arith.constant 0 : i32
    %c0_i32_0 = arith.constant 0 : i32
    %c0_i32_1 = arith.constant 0 : i32
    return %c0_i32, %c0_i32_0 : i32, i32
  }
  func.func @transform_11(%arg0: i32) -> (i32, i32) {
    %c0_i32 = arith.constant 0 : i32
    %c0_i32_0 = arith.constant 0 : i32
    %c0_i32_1 = arith.constant 0 : i32
    return %c0_i32, %c0_i32_0 : i32, i32
  }
  func.func @transform_12(%arg0: i32) -> (i32, i32, i32) {
    %c0_i32 = arith.constant 0 : i32
    %c0_i32_0 = arith.constant 0 : i32
    %c0_i32_1 = arith.constant 0 : i32
    return %arg0, %c0_i32, %c0_i32_0 : i32, i32, i32
  }
}

</mosaic_0001>

<bundles_post_ra>
// kernel: tpu_custom_call.1
= control target key start
LH: loop header
LB: loop body
LE: loop exit
PB: predicated region body
PF: predicated region fallthrough
CT: control target
= control target key end

     0   :  { %s2503_s0 = inlined_call_operand.vmem [shape: f32[2,8,32], index: 0, kind: input, shape index: {}]   ;;  %s2504_s1 = inlined_call_operand.vmem [shape: bf16[32,128], index: 1, kind: input, shape index: {}]   ;;  %s2505_s2 = inlined_call_operand.vmem [shape: f32[4,64], index: 2, kind: input, shape index: {}]   ;;  %s2506_s3 = inlined_call_operand.vmem [shape: f32[1,64], index: 3, kind: input, shape index: {}]   ;;  %s2507_s4 = inlined_call_operand.vmem [shape: f32[64,2], index: 4, kind: input, shape index: {}]   ;;  %s2508_s5 = inlined_call_operand.vmem [shape: f32[2,64], index: 5, kind: input, shape index: {}]   ;;  %s2509_s6 = inlined_call_operand.vmem [shape: f32[1,64], index: 6, kind: input, shape index: {}]   ;;  %s2510_s7 = inlined_call_operand.vmem [shape: f32[16,64], index: 7, kind: input, shape index: {}]   ;;  %s2511_s8 = inlined_call_operand.vmem [shape: f32[1,64], index: 8, kind: input, shape index: {}]   ;;  %s2512_s9 = inlined_call_operand.vmem [shape: bf16[64,32], index: 9, kind: input, shape index: {}]   ;;  %s2513_s10 = inlined_call_operand.vmem [shape: bf16[64,32], index: 10, kind: input, shape index: {}]   ;;  %s2514_s11 = inlined_call_operand.vmem [shape: f32[1,32], index: 11, kind: input, shape index: {}]   ;;  %s2515_s12 = inlined_call_operand.hbm [shape: f32[2,8,32], index: 12, kind: output, shape index: {}]  }
   0x1   :  { %2516 = sst [smem:[#allocation8_spill]] %s2503_s0 }
   0x2   :  { %2517 = sst [smem:[#allocation9_spill]] %s2504_s1 }
   0x3   :  { %17 = vsyncpa [#allocation6], 0 }
   0x4   :  { %19 = vsyncpa [#allocation6 + $0x1], 0  ;;  %s2109_s21 = smov 0   ;;  %s2111_s22 = smov 0  }
   0x5   :  { %s2113_s23 = smov 0   ;;  %s2115_s24 = smov 0  }
   0x6 LB: > { %s2130_s25 = sadd.s32 4294967295, %s2005_s24   ;;  %s1649_s26 = sadd.s32 4294967294, %s2005_s24   ;;  %s2005_s24 = sphi %s2115_s24, %s2525_s24   ;;  %s2001_s23 = sphi %s2113_s23, %s2524_s23   ;;  %s1997_s22 = sphi %s2111_s22, %s2523_s22   ;;  %s1993_s21 = sphi %s2109_s21, %s2522_s21  }
   0x7   : > { %s2134_s27 = sadd.s32 1, %s2005_s24   ;;  %s289_s28 = sadd.s32 1, %s2001_s23 }
   0x8   : > { %s286_s29 = ssub.s32 %s2005_s24, %s2134_s27  ;;  %p299_p0 = scmp.ne.s32.totalorder %s2001_s23, %s1997_s22 }
   0x9   : > { %p287_p1 = scmp.eq.s32.totalorder %s286_s29, 0  ;;  %p300_p2 = scmp.eq.s32.totalorder %s2130_s25, 1 }
   0xa   : > { %p305_p3 = scmp.ne.s32.totalorder %s1997_s22, %s1993_s21  ;;  %p306_p4 = scmp.eq.s32.totalorder %s1649_s26, 1 }
   0xb   : > { %s2145_s30 = scalar_select %p287_p1, %s2001_s23, %s289_s28  }
   0xc   : > { %p2147_p5 = por %p300_p2, %p299_p0  ;;  %p2151_p6 = por %p306_p4, %p305_p3 }
   0xd   : > { %p1652_p7 = scmp.ge.s32.totalorder %s2005_s24, 1  ;;  %p364_p8 = scmp.lt.s32.totalorder %s2005_s24, 3 }
   0xf   : > { %p365_p9 = pnand %p1652_p7, %p364_p8 }
  0x10   : > { %p405_p10 = scmp.lt.s32.totalorder (!%p365_p9), %s2130_s25, 1  ;;  %s2520_s0 = sld [smem:[#allocation8_spill]] (!%p365_p9)  ;;  %vm412_vm0 = vcmask (!%p365_p9), 261120   ;;  %v2007_v4 = vmov (!%p365_p9), 0.0   ;;  %vm2008_vm1 = vmmov (!%p365_p9), 0   ;;  %v621_v14 = vld [vmem:[%s2507_s4] sm:$0xff] (!%p365_p9) }
  0x11   : > { %368 = sbr.rel (%p365_p9) target bundleno = 1290 (0x50a), region = 68  ;;  %s2521_s1 = sld [smem:[#allocation9_spill]] (!%p365_p9)  ;;  %1707 = vmatprep.subr.bf16.mxu1 (!%p365_p9), %v2007_v4  ;;  %1711 = vmatprep.mubr.msk.bf16.mxu1 (!%p365_p9), %vm2008_vm1, %v2007_v4  ;;  %v1655_v10 = vld [vmem:[%s2514_s11] ss:$0 sm:$0xff] (!%p365_p9)  ;;  %v622_v15 = vld [vmem:[%s2507_s4 + $0x8] sm:$0xff] (!%p365_p9)  ;;  %v2009_v17 = vmov (!%p365_p9), 0.0|0.0  }
  0x12   : > { %1743 = vmatprep.mubr.msk.f32.mxu0 (!%p365_p9), %vm2008_vm1, %v2007_v4  ;;  %v1884_v16 = vld [vmem:[%s2512_s9] sm:$0xff] (!%p365_p9)   ;;  %1763 = vmatprep.subr.bf16.mxu0 (!%p365_p9), %v2009_v17  ;;  %v1764_v18 = vpack.c.bf16 (!%p365_p9), %v622_v15, %v621_v14  ;;  %v623_v19 = vld [vmem:[%s2507_s4 + $0x10] sm:$0xff] (!%p365_p9)  ;;  %v624_v20 = vld [vmem:[%s2507_s4 + $0x18] sm:$0xff] (!%p365_p9)  ;;  %vm492_vm2 = vcmask (!%p365_p9), 1042432   ;;  %vm503_vm3 = vcmask (!%p365_p9), 1041408   ;;  %vm514_vm4 = vcmask (!%p365_p9), 1040384  }
  0x13   : > { %v1885_v21 = vld [vmem:[%s2512_s9 + $0x8] sm:$0xff] (!%p365_p9)   ;;  %v1767_v22 = vpack.c.bf16 (!%p365_p9), %v624_v20, %v623_v19  ;;  %v625_v23 = vld [vmem:[%s2507_s4 + $0x20] sm:$0xff] (!%p365_p9)  ;;  %v1886_v25 = vld [vmem:[%s2512_s9 + $0x10] sm:$0xff] (!%p365_p9)   ;;  %vm577_vm5 = vcmask (!%p365_p9), 523264   ;;  %v2010_v62 = vmov (!%p365_p9), 1   ;;  %v2011_v63 = vmov (!%p365_p9), 0  }
  0x14   : > { %1765 = vmatpush3.bf16.msra.mxu0 (!%p365_p9), %v1764_v18  ;;  %v626_v24 = vld [vmem:[%s2507_s4 + $0x28] sm:$0xff] (!%p365_p9)  ;;  %v627_v27 = vld [vmem:[%s2507_s4 + $0x30] sm:$0xff] (!%p365_p9)  ;;  %v628_v28 = vld [vmem:[%s2507_s4 + $0x38] sm:$0xff] (!%p365_p9)  ;;  %1851 = vset.pattern.permute.xlu1 (!%p365_p9), %v2010_v62  ;;  %vm710_vm6 = vcmask (!%p365_p9), 15360   ;;  %v2019_v14 = vmov (!%p365_p9), 22   ;;  %v2020_v15 = vmov (!%p365_p9), 6  }
  0x15   : > { %1766 = vmatprep.subr.bf16.mxu0 (!%p365_p9), %v2009_v17  ;;  %v1770_v26 = vpack.c.bf16 (!%p365_p9), %v626_v24, %v625_v23  ;;  %v1887_v29 = vld [vmem:[%s2512_s9 + $0x18] sm:$0xff] (!%p365_p9)   ;;  %v1773_v30 = vpack.c.bf16 (!%p365_p9), %v628_v28, %v627_v27  ;;  %v1659_v32 = vld [vmem:[%s2505_s2] ss:$0 sm:$0xff] (!%p365_p9)  ;;  %v1660_v35 = vld [vmem:[%s2505_s2 + $0x1] ss:$0 sm:$0xff] (!%p365_p9)  ;;  %1850 = vset.pattern.permute.xlu0 (!%p365_p9), %v2011_v63  ;;  %v2023_v18 = vmov (!%p365_p9), 28  }
  0x16   : > { %v1661_v42 = vld [vmem:[%s2505_s2 + $0x2] ss:$0 sm:$0xff] (!%p365_p9)  ;;  %v1662_v46 = vld [vmem:[%s2505_s2 + $0x3] ss:$0 sm:$0xff] (!%p365_p9)  ;;  %v1663_v51 = vld [vmem:[%s2506_s3] ss:$0 sm:$0xff] (!%p365_p9) }
  0x17   : > { %v1882_v3 = vld [vmem:[%s2521_s1] sm:$0xff] (!%p365_p9)   ;;  %v1883_v5 = vld [vmem:[%s2521_s1 + $0x8] sm:$0xff] (!%p365_p9)   ;;  %v2024_v19 = vmov (!%p365_p9), 8   ;;  %v2025_v20 = vmov (!%p365_p9), 31   ;;  %v2028_v23 = vmov (!%p365_p9), 11   ;;  %v2029_v24 = vmov (!%p365_p9), 12  }
  0x18   : > { %s406_s15 = scalar_select %p405_p10, %s2130_s25, 1  ;;  %1708 = vmatpush3.bf16.msra.mxu1 %v1882_v3  ;;  %1768 = vmatpush3.bf16.msra.mxu0 %v1767_v22  ;;  %v702_v61 = vld [vmem:[%s2508_s5] sm:$0x3]  ;;  %v2027_v22 = vmov 10   ;;  %v2032_v27 = vmov 17   ;;  %v2033_v28 = vmov 18  }
  0x19   : > { %1709 = vmatprep.subr.bf16.mxu1 %v2007_v4  ;;  %1769 = vmatprep.subr.bf16.mxu0 %v2009_v17  ;;  %v1888_v63 = vld [vmem:[%s2513_s10] sm:$0xff]   ;;  %s402_s26 = sand.u32 1, %s1997_s22   ;;  %s1680_s29 = sshll.u32 %s2130_s25, 7 }
  0x1a   : > { %s1654_s16 = sshll.u32 %s406_s15, 3  ;;  %s1653_s28 = sshll.u32 %s402_s26, 3 }
  0x1b   : > { %s2162_s19 = scalar_lea.vmem %s2520_s0, %s1654_s16  ;;  %s2042_s0 = smov 64  }
  0x1c   : > { %v410_v0 = vld [vmem:[%s2162_s19] sm:$0xff]  ;;  %1710 = vmatpush3.bf16.msra.mxu1 %v1883_v5  ;;  %1771 = vmatpush3.bf16.msra.mxu0 %v1770_v26  ;;  %v2031_v26 = vmov 15   ;;  %s2460_s17 = scalar_lea.hbm %s2515_s12, %s1680_s29  ;;  %s1577_s25 = scalar_lea.sflag [#allocation6], %s402_s26 }
  0x1d   : > { %v411_v1 = vmul.f32 %v410_v0, %v410_v0  ;;  %1715 = vmatprep.subr.bf16.mxu1 %v2007_v4  ;;  %1772 = vmatprep.subr.bf16.mxu0 %v2009_v17  ;;  %v2022_v17 = vmov 7  }
  0x1f   : > { %v413_v2 = vsel %vm412_vm0, %v411_v1, 0.0 }
  0x20   : > { %414 = vadd.xlane.f32.xlu0 %v413_v2  ;;  %1774 = vmatpush3.bf16.msra.mxu0 %v1773_v30  ;;  %v2034_v30 = vmov 20  }
  0x21   : > { %1751 = vmatprep.subr.bf16.mxu0 %v2007_v4 }
  0xad   : > { %v415_v6 = vpop.xlane.xlu0 %414 }
  0xae   : > { %v417_v7 = vmul.f32 0.03125, %v415_v6 }
  0xb0   : > { %v418_v8 = vadd.f32 1e-05, %v417_v7  ;;  %v2012_v7 = vmov 2  }
  0xb2   : > { %1892 = vrsqrt.f32 %v418_v8  ;;  %v2013_v8 = vmov 13  }
  0xbc   : > { %v1893_v9 = vpop.eup %1892 }
  0xbd   : > { %v420_v11 = vmul.f32 %v1893_v9, %v410_v0  ;;  %v2014_v9 = vmov 3  }
  0xbf   : > { %v428_v12 = vmul.f32 %v1655_v10, %v420_v11  ;;  %v2015_v10 = vmov 16   ;;  %v2016_v11 = vmov 4  }
  0xc1   : > { %v429_v13 = vpack.c.bf16 %v428_v12, %v428_v12  ;;  %v2017_v12 = vmov 19  }
  0xc3   : > { %1712 = vmatmul.mubr.msk.bf16.vlgmr.msra.gmra.mrb[0].mxu1 %vm412_vm0, %v429_v13  ;;  %v2018_v13 = vmov 5  }
  0xc4   : > { %1723 = vmatprep.mubr.msk.bf16.mxu1 %vm2008_vm1, %v2007_v4  ;;  %1716 = vmatpush3.bf16.msra.mxu1 %v1884_v16  ;;  %v2021_v16 = vmov 25  }
  0xc5   : > { %1717 = vmatprep.subr.bf16.mxu1 %v2007_v4 }
  0xc8   : > { %1718 = vmatpush3.bf16.msra.mxu1 %v1885_v21  ;;  %v2026_v21 = vmov 9  }
  0xc9   : > { %1719 = vmatprep.subr.bf16.mxu1 %v2007_v4 }
  0xcc   : > { %1720 = vmatpush3.bf16.msra.mxu1 %v1886_v25  ;;  %v2030_v25 = vmov 14  }
  0xcd   : > { %1721 = vmatprep.subr.bf16.mxu1 %v2007_v4 }
  0xd0   : > { %1722 = vmatpush3.bf16.msra.mxu1 %v1887_v29 }
  0xd1   : > { %1746 = vmatprep.subr.mxu1 %v2007_v4 }
 0x196   : > { %v2226_v31 = vpop.f32.mrb[0].mxu1 }
 0x197   : > { %v490_v33 = vrot.slane %v2226_v31, 5  ;;  %v501_v34 = vrot.slane %v2226_v31, 6  ;;  %v512_v36 = vrot.slane %v2226_v31, 7  ;;  %v1713_v37 = vpop.f32.mrb[1].mxu1  ;;  %v528_v49 = vmul.f32 %v1662_v46, %v2226_v31 }
 0x198   : > { %v486_v38 = vpop.f32.mrb[2].mxu1  ;;  %v1488_v29 = vsub.f32 0.0, %v2226_v31  ;;  %v2038_v37 = vmov 26  }
 0x199   : > { %v493_v39 = vsel %vm492_vm2, 0.0, %v490_v33  ;;  %v504_v40 = vsel %vm503_vm3, 0.0, %v501_v34  ;;  %v515_v41 = vsel %vm514_vm4, 0.0, %v512_v36  ;;  %v1714_v43 = vpop.f32.mrb[3].mxu1  ;;  %v2035_v33 = vmov 21  }
 0x19a   : > { %v499_v44 = vmul.f32 %v1659_v32, %v493_v39  ;;  %v510_v45 = vmul.f32 %v1660_v35, %v504_v40  ;;  %v521_v47 = vmul.f32 %v1661_v42, %v515_v41  ;;  %v1489_v32 = vmul.f32 1.442695, %v1488_v29 }
 0x19b   : > { %v2036_v34 = vmov 23   ;;  %v2037_v35 = vmov 24   ;;  %v2039_v39 = vmov 27   ;;  %v2040_v40 = vmov 29  }
 0x19c   : > { %v511_v48 = vadd.f32 %v510_v45, %v499_v44  ;;  %v2041_v42 = vmov 30  }
 0x19e   : > { %v522_v50 = vadd.f32 %v521_v47, %v511_v48 }
 0x1a0   : > { %v529_v52 = vadd.f32 %v528_v49, %v522_v50  ;;  %v1670_v49 = vld [vmem:[%s2509_s6] ss:$0 sm:$0xff] }
 0x1a2   : > { %v537_v53 = vadd.f32 %v1663_v51, %v529_v52 }
 0x1a4   : > { %v538_v54 = vsub.f32 0.0, %v537_v53 }
 0x1a6   : > { %v539_v55 = vmul.f32 1.442695, %v538_v54 }
 0x1a8   : > { %1894 = vpow2.f32 %v539_v55 }
 0x1b2   : > { %v1895_v56 = vpop.eup %1894 }
 0x1b3   : > { %v541_v57 = vadd.f32 1.0, %v1895_v56 }
 0x1b5   : > { %1896 = vrcp.f32 %v541_v57  ;;  %v796_v57 = vld [vmem:[%s2510_s7] sm:$0xff] }
 0x1b6   : > { %1898 = vpow2.f32 %v1489_v32 }
 0x1bf   : > { %v1897_v58 = vpop.eup %1896 }
 0x1c0   : > { %v2248_v59 = vmul.f32 %v1897_v58, %v537_v53  ;;  %v1899_v36 = vpop.eup %1898  ;;  %v797_v58 = vld [vmem:[%s2510_s7 + $0x8] sm:$0xff] }
 0x1c1   : > { %v1491_v38 = vadd.f32 1.0, %v1899_v36 }
 0x1c2   : > { %1744 = vmatmul.mubr.msk.f32.vlgmr.msra.gmra.mrb[0].mxu0 %vm577_vm5, %v2248_v59  ;;  %v544_v60 = vpack.c.bf16 %v2248_v59, %v2248_v59 }
 0x1c3   : > { %1759 = vmatprep.mubr.msk.bf16.mxu0 %vm2008_vm1, %v2007_v4  ;;  %1900 = vrcp.f32 %v1491_v38  ;;  %1752 = vmatpush3.bf16.msra.mxu0 %v1888_v63 }
 0x1c4   : > { %1724 = vmatmul.mubr.msk.bf16.vlgmr.msra.gmra.mrb[4].mxu1 %vm577_vm5, %v544_v60  ;;  %v798_v60 = vmul.f32 1.442695, %v796_v57  ;;  %1753 = vmatprep.subr.bf16.mxu0 %v2007_v4 }
 0x1c5   : > { %1747 = vmatpush3.msk.msra.mxu1 %vm503_vm3, %v702_v61  ;;  %1748 = vmatprep.mubr.msk.f32.mxu1 %vm2008_vm1, %v2007_v4  ;;  %v800_v61 = vmul.f32 1.442695, %v797_v58 }
 0x1cd   : > { %v1901_v41 = vpop.eup %1900 }
 0x1ce   : > { %v1493_v43 = vmul.f32 %v1901_v41, %v2226_v31 }
 0x295   : > { %v698_v0 = vpop.f32.mrb[0].mxu0 }
 0x296   : > { %v1745_v1 = vpop.f32.mrb[1].mxu0  ;;  %1749 = vmatmul.mubr.msk.f32.vlgmr.msra.gmra.mrb[8].mxu1 %vm710_vm6, %v698_v0 }
 0x297   : > { %v2263_v2 = vpop.f32.mrb[4].mxu1  ;;  %v1889_v1 = vld [vmem:[%s2513_s10 + $0x8] sm:$0xff]  }
 0x298   : > { %839 = vperm.xlu1 %1851, %v2263_v2   ;;  %818 = vperm.xlu0 %1850, %v2263_v2   ;;  %v1725_v3 = vpop.f32.mrb[5].mxu1 }
 0x299   : > { %v618_v5 = vpop.f32.mrb[6].mxu1  ;;  %1754 = vmatpush3.bf16.msra.mxu0 %v1889_v1 }
 0x29a   : > { %v1726_v6 = vpop.f32.mrb[7].mxu1  ;;  %v805_v5 = vlaneseq  ;;  %1755 = vmatprep.subr.bf16.mxu0 %v2007_v4 }
 0x29b   : > { %v1890_v6 = vld [vmem:[%s2513_s10 + $0x10] sm:$0xff]  }
 0x29c   : > { %1852 = vset.pattern.permute.xlu1 %v2012_v7  ;;  %1863 = vset.pattern.permute.xlu0 %v2013_v8  ;;  %v806_v7 = vshrl.u32 %v805_v5, 7 }
 0x29d   : > { %861 = vperm.xlu1 %1852, %v2263_v2   ;;  %1103 = vperm.xlu0 %1863, %v2263_v2  }
 0x29e   : > { %1756 = vmatpush3.bf16.msra.mxu0 %v1890_v6 }
 0x29f   : > { %1757 = vmatprep.subr.bf16.mxu0 %v2007_v4 }
 0x2a1   : > { %1853 = vset.pattern.permute.xlu1 %v2014_v9  ;;  %1866 = vset.pattern.permute.xlu0 %v2015_v10 }
 0x2a2   : > { %883 = vperm.xlu1 %1853, %v2263_v2   ;;  %1273 = vperm.xlu0 %1866, %v2263_v2  }
 0x2a6   : > { %1854 = vset.pattern.permute.xlu1 %v2016_v11  ;;  %1869 = vset.pattern.permute.xlu0 %v2017_v12  ;;  %v1891_v11 = vld [vmem:[%s2513_s10 + $0x18] sm:$0xff]  }
 0x2a7   : > { %905 = vperm.xlu1 %1854, %v2263_v2   ;;  %1315 = vperm.xlu0 %1869, %v2263_v2  }
 0x2a8   : > { %1758 = vmatpush3.bf16.msra.mxu0 %v1891_v11 }
 0x2ab   : > { %1855 = vset.pattern.permute.xlu1 %v2018_v13  ;;  %1872 = vset.pattern.permute.xlu0 %v2019_v14  ;;  %v807_v13 = vsub.s32 0, %v806_v7  ;;  %v828_v14 = vsub.s32 1, %v806_v7 }
 0x2ac   : > { %927 = vperm.xlu1 %1855, %v2263_v2   ;;  %1357 = vperm.xlu0 %1872, %v2263_v2  }
 0x2b0   : > { %1856 = vset.pattern.permute.xlu1 %v2020_v15  ;;  %1875 = vset.pattern.permute.xlu0 %v2021_v16  ;;  %v850_v15 = vsub.s32 2, %v806_v7  ;;  %v872_v16 = vsub.s32 3, %v806_v7 }
 0x2b1   : > { %949 = vperm.xlu1 %1856, %v2263_v2   ;;  %1399 = vperm.xlu0 %1875, %v2263_v2  }
 0x2b5   : > { %1857 = vset.pattern.permute.xlu1 %v2022_v17  ;;  %1878 = vset.pattern.permute.xlu0 %v2023_v18  ;;  %v894_v17 = vsub.s32 4, %v806_v7  ;;  %v916_v18 = vsub.s32 5, %v806_v7 }
 0x2b6   : > { %971 = vperm.xlu1 %1857, %v2263_v2   ;;  %1441 = vperm.xlu0 %1878, %v2263_v2  }
 0x2ba   : > { %1858 = vset.pattern.permute.xlu1 %v2024_v19  ;;  %1881 = vset.pattern.permute.xlu0 %v2025_v20  ;;  %v938_v19 = vsub.s32 6, %v806_v7  ;;  %v960_v20 = vsub.s32 7, %v806_v7 }
 0x2bb   : > { %993 = vperm.xlu1 %1858, %v2263_v2   ;;  %1483 = vperm.xlu0 %1881, %v2263_v2  }
 0x2bf   : > { %1859 = vset.pattern.permute.xlu1 %v2026_v21 }
 0x2c0   : > { %1015 = vperm.xlu1 %1859, %v2263_v2  }
 0x2c4   : > { %1860 = vset.pattern.permute.xlu1 %v2027_v22 }
 0x2c5   : > { %1037 = vperm.xlu1 %1860, %v2263_v2  }
 0x2c9   : > { %1861 = vset.pattern.permute.xlu1 %v2028_v23 }
 0x2ca   : > { %1059 = vperm.xlu1 %1861, %v2263_v2  }
 0x2ce   : > { %1862 = vset.pattern.permute.xlu1 %v2029_v24 }
 0x2cf   : > { %1081 = vperm.xlu1 %1862, %v2263_v2  }
 0x2d3   : > { %1864 = vset.pattern.permute.xlu1 %v2030_v25 }
 0x2d4   : > { %1125 = vperm.xlu1 %1864, %v2263_v2  }
 0x2d8   : > { %1865 = vset.pattern.permute.xlu1 %v2031_v26 }
 0x2d9   : > { %1147 = vperm.xlu1 %1865, %v2263_v2  }
 0x2dd   : > { %1867 = vset.pattern.permute.xlu1 %v2032_v27 }
 0x2de   : > { %1287 = vperm.xlu1 %1867, %v2263_v2  }
 0x2e2   : > { %1868 = vset.pattern.permute.xlu1 %v2033_v28 }
 0x2e3   : > { %1301 = vperm.xlu1 %1868, %v2263_v2  }
 0x2e7   : > { %1870 = vset.pattern.permute.xlu1 %v2034_v30 }
 0x2e8   : > { %1329 = vperm.xlu1 %1870, %v2263_v2  }
 0x2ec   : > { %1871 = vset.pattern.permute.xlu1 %v2035_v33 }
 0x2ed   : > { %1343 = vperm.xlu1 %1871, %v2263_v2  }
 0x2f1   : > { %1873 = vset.pattern.permute.xlu1 %v2036_v34 }
 0x2f2   : > { %1371 = vperm.xlu1 %1873, %v2263_v2  }
 0x2f6   : > { %1874 = vset.pattern.permute.xlu1 %v2037_v35 }
 0x2f7   : > { %1385 = vperm.xlu1 %1874, %v2263_v2  }
 0x2fb   : > { %1876 = vset.pattern.permute.xlu1 %v2038_v37 }
 0x2fc   : > { %1413 = vperm.xlu1 %1876, %v2263_v2  }
 0x300   : > { %1877 = vset.pattern.permute.xlu1 %v2039_v39 }
 0x301   : > { %1427 = vperm.xlu1 %1877, %v2263_v2  }
 0x305   : > { %1879 = vset.pattern.permute.xlu1 %v2040_v40 }
 0x306   : > { %1455 = vperm.xlu1 %1879, %v2263_v2  }
 0x30a   : > { %1880 = vset.pattern.permute.xlu1 %v2041_v42 }
 0x30b   : > { %1469 = vperm.xlu1 %1880, %v2263_v2  }
 0x30f   : > { %1495 = vrot.lane.b32.xlu1 %v1493_v43, %s2042_s0  ;;  %s404_s0 = scalar_lea.vmem [#allocation5], %s1653_s28 }
 0x310   : > { %s1590_s1 = sshll.u32 %s404_s0, 4  ;;  %s2462_s1 = int_to_ptr.vmem [resolvable:$true] %s1590_s1 }
 0x311   : > { %s1943_s18 = scalar_lea.vmem %s2462_s1, 128 }
 0x312   : > { %p1944_p11 = scmp.ne.s32.totalorder %s2462_s1, %s1943_s18 }
 0x314   : > { %p1945_p12 = pnand %p1944_p11, %p2147_p5 }
 0x316   : > { %p1946_p13 = pneg %p1945_p12 }
 0x317   : > { %v2299_v44 = vpop.permute.xlu1 %839 }
 0x31c   : > { %v2301_v45 = vpop.permute.xlu1 %861 }
 0x321   : > { %v2303_v46 = vpop.permute.xlu1 %883 }
 0x326   : > { %v2305_v47 = vpop.permute.xlu1 %905 }
 0x32b   : > { %v2307_v48 = vpop.permute.xlu1 %927 }
 0x330   : > { %v2312_v31 = vpop.permute.xlu1 %949 }
 0x335   : > { %v2314_v56 = vpop.permute.xlu1 %971 }
 0x33a   : > { %v2322_v62 = vpop.permute.xlu1 %993 }
 0x33f   : > { %v2330_v2 = vpop.permute.xlu1 %1015 }
 0x344   : > { %v2337_v9 = vpop.permute.xlu1 %1037 }
 0x349   : > { %v2343_v23 = vpop.permute.xlu1 %1059 }
 0x369   : > { %v783_v50 = vpop.f32.mrb[8].mxu1 }
 0x36a   : > { %v784_v51 = vadd.f32 %v1670_v49, %v783_v50  ;;  %v1750_v52 = vpop.f32.mrb[9].mxu1 }
 0x36b   : > { %v819_v52 = vpop.permute.xlu0 %818 }
 0x36c   : > { %v788_v53 = vand.u32 2147483647, %v784_v51  ;;  %v787_v27 = vmax.f32 %v784_v51, 0.0 }
 0x36e   : > { %v789_v54 = vsub.f32 0.0, %v788_v53  ;;  %v2368_v53 = vpop.permute.xlu1 %1081 }
 0x370   : > { %v790_v55 = vmul.f32 1.442695, %v789_v54 }
 0x372   : > { %1902 = vpow2.f32 %v790_v55 }
 0x373   : > { %1904 = vpow2.f32 %v798_v60 }
 0x374   : > { %1906 = vpow2.f32 %v800_v61 }
 0x37c   : > { %v1903_v0 = vpop.eup %1902 }
 0x37d   : > { %v792_v3 = vadd.f32 1.0, %v1903_v0  ;;  %v1905_v8 = vpop.eup %1904 }
 0x37e   : > { %v1907_v10 = vpop.eup %1906  ;;  %v802_v12 = vsub.f32 0.0, %v1905_v8 }
 0x37f   : > { %1908 = vlog2.f32 %v792_v3  ;;  %v803_v21 = vsub.f32 0.0, %v1907_v10 }
 0x380   : > { %v808_v24 = vrot.slane %v802_v12, %v807_v13  ;;  %v829_v25 = vrot.slane %v802_v12, %v828_v14  ;;  %v851_v26 = vrot.slane %v802_v12, %v850_v15  ;;  %v873_v29 = vrot.slane %v802_v12, %v872_v16 }
 0x381   : > { %v895_v30 = vrot.slane %v802_v12, %v894_v17  ;;  %v917_v32 = vrot.slane %v802_v12, %v916_v18  ;;  %v939_v33 = vrot.slane %v802_v12, %v938_v19  ;;  %v961_v4 = vrot.slane %v802_v12, %v960_v20 }
 0x382   : > { %v983_v34 = vrot.slane %v803_v21, %v807_v13  ;;  %v2347_v36 = vrot.slane %v803_v21, %v828_v14  ;;  %v2349_v37 = vrot.slane %v803_v21, %v850_v15  ;;  %v2351_v38 = vrot.slane %v803_v21, %v872_v16  ;;  %v1126_v13 = vpop.permute.xlu1 %1125 }
 0x383   : > { %v2353_v39 = vrot.slane %v803_v21, %v894_v17  ;;  %v2355_v40 = vrot.slane %v803_v21, %v916_v18  ;;  %v2357_v41 = vrot.slane %v803_v21, %v938_v19  ;;  %v2359_v42 = vrot.slane %v803_v21, %v960_v20  ;;  %v1104_v21 = vpop.permute.xlu0 %1103 }
 0x389   : > { %v1909_v22 = vpop.eup %1908 }
 0x38a   : > { %v794_v28 = vmul.f32 0.6931472, %v1909_v22 }
 0x38c   : > { %v2345_v35 = vadd.f32 %v794_v28, %v787_v27  ;;  %v1148_v27 = vpop.permute.xlu1 %1147 }
 0x38e   : > { %v2363_v43 = vmul.f32 %v2345_v35, %v2248_v59  ;;  %v809_v49 = vmul.f32 %v808_v24, %v2345_v35  ;;  %v830_v50 = vmul.f32 %v829_v25, %v2345_v35  ;;  %v852_v51 = vmul.f32 %v851_v26, %v2345_v35 }
 0x38f   : > { %v874_v54 = vmul.f32 %v873_v29, %v2345_v35  ;;  %v896_v55 = vmul.f32 %v895_v30, %v2345_v35  ;;  %v918_v57 = vmul.f32 %v917_v32, %v2345_v35  ;;  %v940_v58 = vmul.f32 %v939_v33, %v2345_v35 }
 0x390   : > { %v810_v60 = vmul.f32 1.442695, %v809_v49  ;;  %v821_v61 = vmul.f32 %v819_v52, %v2363_v43  ;;  %v831_v63 = vmul.f32 1.442695, %v830_v50  ;;  %v842_v0 = vmul.f32 %v2299_v44, %v2363_v43 }
 0x391   : > { %v853_v1 = vmul.f32 1.442695, %v852_v51  ;;  %v864_v3 = vmul.f32 %v2301_v45, %v2363_v43  ;;  %v875_v5 = vmul.f32 1.442695, %v874_v54  ;;  %v886_v6 = vmul.f32 %v2303_v46, %v2363_v43 }
 0x392   : > { %1910 = vpow2.f32 %v810_v60  ;;  %822 = vst [vmem:[#allocation3] ss:$16 sm:$0x3] %v821_v61  ;;  %823 = vst [vmem:[#allocation3] ss:$16 sm:$0xc] %v821_v61  ;;  %v908_v44 = vmul.f32 %v2305_v47, %v2363_v43  ;;  %v930_v45 = vmul.f32 %v2307_v48, %v2363_v43  ;;  %v952_v10 = vmul.f32 %v2312_v31, %v2363_v43 }
 0x393   : > { %824 = vst [vmem:[#allocation3] ss:$16 sm:$0x30] %v821_v61  ;;  %825 = vst [vmem:[#allocation3] ss:$16 sm:$0xc0] %v821_v61  ;;  %1912 = vpow2.f32 %v831_v63  ;;  %v962_v47 = vmul.f32 %v961_v4, %v2345_v35  ;;  %v974_v11 = vmul.f32 %v2314_v56, %v2363_v43  ;;  %v984_v12 = vmul.f32 %v983_v34, %v2345_v35 }
 0x394   : > { %844 = vst [vmem:[#allocation3 + $0x1] ss:$16 sm:$0x3] %v842_v0  ;;  %845 = vst [vmem:[#allocation3 + $0x1] ss:$16 sm:$0xc] %v842_v0  ;;  %1914 = vpow2.f32 %v853_v1  ;;  %v996_v48 = vmul.f32 %v2322_v62, %v2363_v43  ;;  %v1006_v31 = vmul.f32 %v2347_v36, %v2345_v35  ;;  %v1018_v56 = vmul.f32 %v2330_v2, %v2363_v43 }
 0x395   : > { %846 = vst [vmem:[#allocation3 + $0x1] ss:$16 sm:$0x30] %v842_v0  ;;  %847 = vst [vmem:[#allocation3 + $0x1] ss:$16 sm:$0xc0] %v842_v0  ;;  %1916 = vpow2.f32 %v875_v5  ;;  %v1028_v16 = vmul.f32 %v2349_v37, %v2345_v35  ;;  %v1040_v2 = vmul.f32 %v2337_v9, %v2363_v43  ;;  %v1050_v17 = vmul.f32 %v2351_v38, %v2345_v35 }
 0x396   : > { %v897_v7 = vmul.f32 1.442695, %v896_v55  ;;  %v919_v8 = vmul.f32 1.442695, %v918_v57  ;;  %v941_v46 = vmul.f32 1.442695, %v940_v58  ;;  %v1062_v19 = vmul.f32 %v2343_v23, %v2363_v43 }
 0x397   : > { %866 = vst [vmem:[#allocation3 + $0x2] ss:$16 sm:$0x3] %v864_v3  ;;  %867 = vst [vmem:[#allocation3 + $0x2] ss:$16 sm:$0xc] %v864_v3  ;;  %v1072_v20 = vmul.f32 %v2353_v39, %v2345_v35  ;;  %v1084_v9 = vmul.f32 %v2368_v53, %v2363_v43  ;;  %v1094_v24 = vmul.f32 %v2355_v40, %v2345_v35 }
 0x398   : > { %868 = vst [vmem:[#allocation3 + $0x2] ss:$16 sm:$0x30] %v864_v3  ;;  %869 = vst [vmem:[#allocation3 + $0x2] ss:$16 sm:$0xc0] %v864_v3  ;;  %1918 = vpow2.f32 %v897_v7  ;;  %v1106_v25 = vmul.f32 %v1104_v21, %v2363_v43  ;;  %v1116_v26 = vmul.f32 %v2357_v41, %v2345_v35  ;;  %v1128_v29 = vmul.f32 %v1126_v13, %v2363_v43 }
 0x399   : > { %888 = vst [vmem:[#allocation3 + $0x3] ss:$16 sm:$0x3] %v886_v6  ;;  %889 = vst [vmem:[#allocation3 + $0x3] ss:$16 sm:$0xc] %v886_v6  ;;  %1920 = vpow2.f32 %v919_v8  ;;  %v1138_v30 = vmul.f32 %v2359_v42, %v2345_v35  ;;  %v1150_v4 = vmul.f32 %v1148_v27, %v2363_v43 }
 0x39a   : > { %890 = vst [vmem:[#allocation3 + $0x3] ss:$16 sm:$0x30] %v886_v6  ;;  %891 = vst [vmem:[#allocation3 + $0x3] ss:$16 sm:$0xc0] %v886_v6  ;;  %1922 = vpow2.f32 %v941_v46 }
 0x39b   : > { %910 = vst [vmem:[#allocation3 + $0x4] ss:$16 sm:$0x3] %v908_v44  ;;  %911 = vst [vmem:[#allocation3 + $0x4] ss:$16 sm:$0xc] %v908_v44 }
 0x39c   : > { %912 = vst [vmem:[#allocation3 + $0x4] ss:$16 sm:$0x30] %v908_v44  ;;  %913 = vst [vmem:[#allocation3 + $0x4] ss:$16 sm:$0xc0] %v908_v44  ;;  %v1911_v32 = vpop.eup %1910 }
 0x39d   : > { %932 = vst [vmem:[#allocation3 + $0x5] ss:$16 sm:$0x3] %v930_v45  ;;  %933 = vst [vmem:[#allocation3 + $0x5] ss:$16 sm:$0xc] %v930_v45  ;;  %v1913_v34 = vpop.eup %1912 }
 0x39e   : > { %934 = vst [vmem:[#allocation3 + $0x5] ss:$16 sm:$0x30] %v930_v45  ;;  %935 = vst [vmem:[#allocation3 + $0x5] ss:$16 sm:$0xc0] %v930_v45  ;;  %v1915_v36 = vpop.eup %1914 }
 0x39f   : > { %954 = vst [vmem:[#allocation3 + $0x6] ss:$16 sm:$0x3] %v952_v10  ;;  %955 = vst [vmem:[#allocation3 + $0x6] ss:$16 sm:$0xc] %v952_v10  ;;  %v1917_v37 = vpop.eup %1916 }
 0x3a0   : > { %956 = vst [vmem:[#allocation3 + $0x6] ss:$16 sm:$0x30] %v952_v10  ;;  %957 = vst [vmem:[#allocation3 + $0x6] ss:$16 sm:$0xc0] %v952_v10 }
 0x3a1   : > { %v963_v14 = vmul.f32 1.442695, %v962_v47  ;;  %976 = vst [vmem:[#allocation3 + $0x7] ss:$16 sm:$0x3] %v974_v11 }
 0x3a2   : > { %977 = vst [vmem:[#allocation3 + $0x7] ss:$16 sm:$0xc] %v974_v11  ;;  %978 = vst [vmem:[#allocation3 + $0x7] ss:$16 sm:$0x30] %v974_v11  ;;  %v1919_v38 = vpop.eup %1918 }
 0x3a3   : > { %979 = vst [vmem:[#allocation3 + $0x7] ss:$16 sm:$0xc0] %v974_v11  ;;  %v985_v15 = vmul.f32 1.442695, %v984_v12  ;;  %1924 = vpow2.f32 %v963_v14  ;;  %v1921_v39 = vpop.eup %1920  ;;  %v2422_v14 = vpop.permute.xlu1 %1287 }
 0x3a4   : > { %998 = vst [vmem:[#allocation3 + $0x8] ss:$16 sm:$0x3] %v996_v48  ;;  %999 = vst [vmem:[#allocation3 + $0x8] ss:$16 sm:$0xc] %v996_v48  ;;  %v1923_v40 = vpop.eup %1922 }
 0x3a5   : > { %1000 = vst [vmem:[#allocation3 + $0x8] ss:$16 sm:$0x30] %v996_v48  ;;  %1001 = vst [vmem:[#allocation3 + $0x8] ss:$16 sm:$0xc0] %v996_v48  ;;  %1926 = vpow2.f32 %v985_v15 }
 0x3a6   : > { %v1007_v62 = vmul.f32 1.442695, %v1006_v31  ;;  %1020 = vst [vmem:[#allocation3 + $0x9] ss:$16 sm:$0x3] %v1018_v56 }
 0x3a7   : > { %1021 = vst [vmem:[#allocation3 + $0x9] ss:$16 sm:$0xc] %v1018_v56  ;;  %1022 = vst [vmem:[#allocation3 + $0x9] ss:$16 sm:$0x30] %v1018_v56 }
 0x3a8   : > { %1023 = vst [vmem:[#allocation3 + $0x9] ss:$16 sm:$0xc0] %v1018_v56  ;;  %v1029_v18 = vmul.f32 1.442695, %v1028_v16  ;;  %1928 = vpow2.f32 %v1007_v62  ;;  %v1160_v58 = vld [vmem:[#allocation3] sm:$0xff] }
 0x3a9   : > { %1042 = vst [vmem:[#allocation3 + $0xa] ss:$16 sm:$0x3] %v1040_v2  ;;  %1043 = vst [vmem:[#allocation3 + $0xa] ss:$16 sm:$0xc] %v1040_v2 }
 0x3aa   : > { %1044 = vst [vmem:[#allocation3 + $0xa] ss:$16 sm:$0x30] %v1040_v2  ;;  %1045 = vst [vmem:[#allocation3 + $0xa] ss:$16 sm:$0xc0] %v1040_v2  ;;  %1930 = vpow2.f32 %v1029_v18 }
 0x3ab   : > { %v1051_v22 = vmul.f32 1.442695, %v1050_v17  ;;  %1064 = vst [vmem:[#allocation3 + $0xb] ss:$16 sm:$0x3] %v1062_v19  ;;  %v1172_v0 = vld [vmem:[#allocation3 + $0x10] sm:$0xff] }
 0x3ac   : > { %1065 = vst [vmem:[#allocation3 + $0xb] ss:$16 sm:$0xc] %v1062_v19  ;;  %1066 = vst [vmem:[#allocation3 + $0xb] ss:$16 sm:$0x30] %v1062_v19 }
 0x3ad   : > { %1067 = vst [vmem:[#allocation3 + $0xb] ss:$16 sm:$0xc0] %v1062_v19  ;;  %v1073_v23 = vmul.f32 1.442695, %v1072_v20  ;;  %1932 = vpow2.f32 %v1051_v22  ;;  %v1925_v41 = vpop.eup %1924  ;;  %v1185_v44 = vld [vmem:[#allocation3 + $0x20] sm:$0xff] }
 0x3ae   : > { %1086 = vst [vmem:[#allocation3 + $0xc] ss:$16 sm:$0x3] %v1084_v9  ;;  %1087 = vst [vmem:[#allocation3 + $0xc] ss:$16 sm:$0xc] %v1084_v9 }
 0x3af   : > { %1088 = vst [vmem:[#allocation3 + $0xc] ss:$16 sm:$0x30] %v1084_v9  ;;  %1089 = vst [vmem:[#allocation3 + $0xc] ss:$16 sm:$0xc0] %v1084_v9  ;;  %1934 = vpow2.f32 %v1073_v23  ;;  %v1927_v42 = vpop.eup %1926  ;;  %v2428_v23 = vpop.permute.xlu1 %1301 }
 0x3b0   : > { %v1095_v28 = vmul.f32 1.442695, %v1094_v24  ;;  %1108 = vst [vmem:[#allocation3 + $0xd] ss:$16 sm:$0x3] %v1106_v25  ;;  %v1198_v13 = vld [vmem:[#allocation3 + $0x30] sm:$0xff] }
 0x3b1   : > { %1109 = vst [vmem:[#allocation3 + $0xd] ss:$16 sm:$0xc] %v1106_v25  ;;  %1110 = vst [vmem:[#allocation3 + $0xd] ss:$16 sm:$0x30] %v1106_v25 }
 0x3b2   : > { %1111 = vst [vmem:[#allocation3 + $0xd] ss:$16 sm:$0xc0] %v1106_v25  ;;  %v1117_v33 = vmul.f32 1.442695, %v1116_v26  ;;  %1936 = vpow2.f32 %v1095_v28  ;;  %v1929_v43 = vpop.eup %1928  ;;  %v1211_v17 = vld [vmem:[#allocation3 + $0x40] sm:$0xff] }
 0x3b3   : > { %812 = vst [vmem:[#allocation2] ss:$16 sm:$0x3] %v1911_v32  ;;  %813 = vst [vmem:[#allocation2] ss:$16 sm:$0xc] %v1911_v32 }
 0x3b4   : > { %814 = vst [vmem:[#allocation2] ss:$16 sm:$0x30] %v1911_v32  ;;  %815 = vst [vmem:[#allocation2] ss:$16 sm:$0xc0] %v1911_v32  ;;  %1938 = vpow2.f32 %v1117_v33  ;;  %v1931_v49 = vpop.eup %1930 }
 0x3b5   : > { %1130 = vst [vmem:[#allocation3 + $0xe] ss:$16 sm:$0x3] %v1128_v29  ;;  %1131 = vst [vmem:[#allocation3 + $0xe] ss:$16 sm:$0xc] %v1128_v29 }
 0x3b6   : > { %1132 = vst [vmem:[#allocation3 + $0xe] ss:$16 sm:$0x30] %v1128_v29  ;;  %1133 = vst [vmem:[#allocation3 + $0xe] ss:$16 sm:$0xc0] %v1128_v29 }
 0x3b7   : > { %v1139_v35 = vmul.f32 1.442695, %v1138_v30  ;;  %834 = vst [vmem:[#allocation2 + $0x1] ss:$16 sm:$0x3] %v1913_v34  ;;  %v1933_v50 = vpop.eup %1932  ;;  %v1224_v25 = vld [vmem:[#allocation3 + $0x50] sm:$0xff] }
 0x3b8   : > { %835 = vst [vmem:[#allocation2 + $0x1] ss:$16 sm:$0xc] %v1913_v34  ;;  %836 = vst [vmem:[#allocation2 + $0x1] ss:$16 sm:$0x30] %v1913_v34 }
 0x3b9   : > { %837 = vst [vmem:[#allocation2 + $0x1] ss:$16 sm:$0xc0] %v1913_v34  ;;  %1152 = vst [vmem:[#allocation3 + $0xf] ss:$16 sm:$0x3] %v1150_v4  ;;  %1940 = vpow2.f32 %v1139_v35  ;;  %v1935_v51 = vpop.eup %1934 }
 0x3ba   : > { %1153 = vst [vmem:[#allocation3 + $0xf] ss:$16 sm:$0xc] %v1150_v4  ;;  %1154 = vst [vmem:[#allocation3 + $0xf] ss:$16 sm:$0x30] %v1150_v4 }
 0x3bb   : > { %1155 = vst [vmem:[#allocation3 + $0xf] ss:$16 sm:$0xc0] %v1150_v4  ;;  %856 = vst [vmem:[#allocation2 + $0x2] ss:$16 sm:$0x3] %v1915_v36 }
 0x3bc   : > { %857 = vst [vmem:[#allocation2 + $0x2] ss:$16 sm:$0xc] %v1915_v36  ;;  %858 = vst [vmem:[#allocation2 + $0x2] ss:$16 sm:$0x30] %v1915_v36  ;;  %v1937_v52 = vpop.eup %1936 }
 0x3bd   : > { %859 = vst [vmem:[#allocation2 + $0x2] ss:$16 sm:$0xc0] %v1915_v36  ;;  %878 = vst [vmem:[#allocation2 + $0x3] ss:$16 sm:$0x3] %v1917_v37 }
 0x3be   : > { %879 = vst [vmem:[#allocation2 + $0x3] ss:$16 sm:$0xc] %v1917_v37  ;;  %880 = vst [vmem:[#allocation2 + $0x3] ss:$16 sm:$0x30] %v1917_v37  ;;  %v1939_v53 = vpop.eup %1938 }
 0x3bf   : > { %881 = vst [vmem:[#allocation2 + $0x3] ss:$16 sm:$0xc0] %v1917_v37  ;;  %900 = vst [vmem:[#allocation2 + $0x4] ss:$16 sm:$0x3] %v1919_v38  ;;  %v2432_v37 = vpop.permute.xlu1 %1329 }
 0x3c0   : > { %901 = vst [vmem:[#allocation2 + $0x4] ss:$16 sm:$0xc] %v1919_v38  ;;  %902 = vst [vmem:[#allocation2 + $0x4] ss:$16 sm:$0x30] %v1919_v38 }
 0x3c1   : > { %903 = vst [vmem:[#allocation2 + $0x4] ss:$16 sm:$0xc0] %v1919_v38  ;;  %922 = vst [vmem:[#allocation2 + $0x5] ss:$16 sm:$0x3] %v1921_v39 }
 0x3c2   : > { %923 = vst [vmem:[#allocation2 + $0x5] ss:$16 sm:$0xc] %v1921_v39  ;;  %924 = vst [vmem:[#allocation2 + $0x5] ss:$16 sm:$0x30] %v1921_v39 }
 0x3c3   : > { %925 = vst [vmem:[#allocation2 + $0x5] ss:$16 sm:$0xc0] %v1921_v39  ;;  %944 = vst [vmem:[#allocation2 + $0x6] ss:$16 sm:$0x3] %v1923_v40  ;;  %v1941_v54 = vpop.eup %1940 }
 0x3c4   : > { %945 = vst [vmem:[#allocation2 + $0x6] ss:$16 sm:$0xc] %v1923_v40  ;;  %946 = vst [vmem:[#allocation2 + $0x6] ss:$16 sm:$0x30] %v1923_v40 }
 0x3c5   : > { %947 = vst [vmem:[#allocation2 + $0x6] ss:$16 sm:$0xc0] %v1923_v40  ;;  %966 = vst [vmem:[#allocation2 + $0x7] ss:$16 sm:$0x3] %v1925_v41 }
 0x3c6   : > { %967 = vst [vmem:[#allocation2 + $0x7] ss:$16 sm:$0xc] %v1925_v41  ;;  %968 = vst [vmem:[#allocation2 + $0x7] ss:$16 sm:$0x30] %v1925_v41 }
 0x3c7   : > { %969 = vst [vmem:[#allocation2 + $0x7] ss:$16 sm:$0xc0] %v1925_v41  ;;  %988 = vst [vmem:[#allocation2 + $0x8] ss:$16 sm:$0x3] %v1927_v42 }
 0x3c8   : > { %989 = vst [vmem:[#allocation2 + $0x8] ss:$16 sm:$0xc] %v1927_v42  ;;  %990 = vst [vmem:[#allocation2 + $0x8] ss:$16 sm:$0x30] %v1927_v42 }
 0x3c9   : > { %991 = vst [vmem:[#allocation2 + $0x8] ss:$16 sm:$0xc0] %v1927_v42  ;;  %1010 = vst [vmem:[#allocation2 + $0x9] ss:$16 sm:$0x3] %v1929_v43 }
 0x3ca   : > { %1011 = vst [vmem:[#allocation2 + $0x9] ss:$16 sm:$0xc] %v1929_v43  ;;  %1012 = vst [vmem:[#allocation2 + $0x9] ss:$16 sm:$0x30] %v1929_v43 }
 0x3cb   : > { %1013 = vst [vmem:[#allocation2 + $0x9] ss:$16 sm:$0xc0] %v1929_v43  ;;  %1032 = vst [vmem:[#allocation2 + $0xa] ss:$16 sm:$0x3] %v1931_v49 }
 0x3cc   : > { %1033 = vst [vmem:[#allocation2 + $0xa] ss:$16 sm:$0xc] %v1931_v49  ;;  %1034 = vst [vmem:[#allocation2 + $0xa] ss:$16 sm:$0x30] %v1931_v49 }
 0x3cd   : > { %1035 = vst [vmem:[#allocation2 + $0xa] ss:$16 sm:$0xc0] %v1931_v49  ;;  %1054 = vst [vmem:[#allocation2 + $0xb] ss:$16 sm:$0x3] %v1933_v50 }
 0x3ce   : > { %1055 = vst [vmem:[#allocation2 + $0xb] ss:$16 sm:$0xc] %v1933_v50  ;;  %1056 = vst [vmem:[#allocation2 + $0xb] ss:$16 sm:$0x30] %v1933_v50 }
 0x3cf   : > { %1057 = vst [vmem:[#allocation2 + $0xb] ss:$16 sm:$0xc0] %v1933_v50  ;;  %1076 = vst [vmem:[#allocation2 + $0xc] ss:$16 sm:$0x3] %v1935_v51 }
 0x3d0   : > { %1077 = vst [vmem:[#allocation2 + $0xc] ss:$16 sm:$0xc] %v1935_v51  ;;  %1078 = vst [vmem:[#allocation2 + $0xc] ss:$16 sm:$0x30] %v1935_v51 }
 0x3d1   : > { %1079 = vst [vmem:[#allocation2 + $0xc] ss:$16 sm:$0xc0] %v1935_v51  ;;  %1098 = vst [vmem:[#allocation2 + $0xd] ss:$16 sm:$0x3] %v1937_v52 }
 0x3d2   : > { %1099 = vst [vmem:[#allocation2 + $0xd] ss:$16 sm:$0xc] %v1937_v52  ;;  %1100 = vst [vmem:[#allocation2 + $0xd] ss:$16 sm:$0x30] %v1937_v52 }
 0x3d3   : > { %1101 = vst [vmem:[#allocation2 + $0xd] ss:$16 sm:$0xc0] %v1937_v52  ;;  %v1156_v55 = vld [vmem:[#allocation2] sm:$0xff]  ;;  %v1167_v61 = vld [vmem:[#allocation2 + $0x10] sm:$0xff]  ;;  %v1161_v8 = vld [vmem:[#allocation3 + $0x8] sm:$0xff] }
 0x3d4   : > { %1120 = vst [vmem:[#allocation2 + $0xe] ss:$16 sm:$0x3] %v1939_v53  ;;  %1121 = vst [vmem:[#allocation2 + $0xe] ss:$16 sm:$0xc] %v1939_v53 }
 0x3d5   : > { %1122 = vst [vmem:[#allocation2 + $0xe] ss:$16 sm:$0x30] %v1939_v53  ;;  %1123 = vst [vmem:[#allocation2 + $0xe] ss:$16 sm:$0xc0] %v1939_v53 }
 0x3d6   : > { %v1158_v57 = vmul.f32 0.0, %v1156_v55  ;;  %1142 = vst [vmem:[#allocation2 + $0xf] ss:$16 sm:$0x3] %v1941_v54  ;;  %v1180_v3 = vld [vmem:[#allocation2 + $0x20] sm:$0xff]  ;;  %v1193_v10 = vld [vmem:[#allocation2 + $0x30] sm:$0xff] }
 0x3d7   : > { %1143 = vst [vmem:[#allocation2 + $0xf] ss:$16 sm:$0xc] %v1941_v54  ;;  %1144 = vst [vmem:[#allocation2 + $0xf] ss:$16 sm:$0x30] %v1941_v54 }
 0x3d8   : > { %1145 = vst [vmem:[#allocation2 + $0xf] ss:$16 sm:$0xc0] %v1941_v54  ;;  %v1162_v60 = vadd.f32 %v1160_v58, %v1158_v57  ;;  %v1173_v48 = vld [vmem:[#allocation3 + $0x18] sm:$0xff]  ;;  %v1206_v15 = vld [vmem:[#allocation2 + $0x40] sm:$0xff]  ;;  %v1186_v18 = vld [vmem:[#allocation3 + $0x28] sm:$0xff]  ;;  %v2438_v54 = vpop.permute.xlu1 %1343 }
 0x3d9   : > { %v1219_v21 = vld [vmem:[#allocation2 + $0x50] sm:$0xff]  ;;  %v1199_v26 = vld [vmem:[#allocation3 + $0x38] sm:$0xff]  ;;  %v1232_v29 = vld [vmem:[#allocation2 + $0x60] sm:$0xff] }
 0x3da   : > { %1164 = vst.msk [vmem:[#allocation4] sm:$0xff] %vm577_vm5, %v1162_v60  ;;  %v1169_v63 = vmul.f32 %v1167_v61, %v1162_v60  ;;  %v1237_v4 = vld [vmem:[#allocation3 + $0x60] sm:$0xff]  ;;  %v1212_v34 = vld [vmem:[#allocation3 + $0x48] sm:$0xff]  ;;  %v1245_v38 = vld [vmem:[#allocation2 + $0x70] sm:$0xff] }
 0x3db   : > { %v1250_v42 = vld [vmem:[#allocation3 + $0x70] sm:$0xff]  ;;  %v1225_v43 = vld [vmem:[#allocation3 + $0x58] sm:$0xff]  ;;  %v1238_v53 = vld [vmem:[#allocation3 + $0x68] sm:$0xff] }
 0x3dc   : > { %v1174_v1 = vadd.f32 %v1172_v0, %v1169_v63 }
 0x3dd   : > { %v1157_v5 = vld [vmem:[#allocation2 + $0x8] sm:$0xff]  ;;  %v1168_v47 = vld [vmem:[#allocation2 + $0x18] sm:$0xff] }
 0x3de   : > { %1177 = vst.msk [vmem:[#allocation4 + $0x10] sm:$0xff] %vm577_vm5, %v1174_v1  ;;  %v1182_v6 = vmul.f32 %v1180_v3, %v1174_v1  ;;  %v1159_v7 = vmul.f32 0.0, %v1157_v5  ;;  %v1181_v16 = vld [vmem:[#allocation2 + $0x28] sm:$0xff]  ;;  %v1194_v22 = vld [vmem:[#allocation2 + $0x38] sm:$0xff]  ;;  %v1673_v5 = vld [vmem:[%s2511_s8] ss:$0 sm:$0xff] }
 0x3df   : > { %v1207_v30 = vld [vmem:[#allocation2 + $0x48] sm:$0xff]  ;;  %v1220_v39 = vld [vmem:[#allocation2 + $0x58] sm:$0xff] }
 0x3e0   : > { %v1187_v45 = vadd.f32 %v1185_v44, %v1182_v6  ;;  %v1163_v46 = vadd.f32 %v1161_v8, %v1159_v7  ;;  %v1233_v51 = vld [vmem:[#allocation2 + $0x68] sm:$0xff]  ;;  %v1246_v60 = vld [vmem:[#allocation2 + $0x78] sm:$0xff] }
 0x3e2   : > { %1190 = vst.msk [vmem:[#allocation4 + $0x20] sm:$0xff] %vm577_vm5, %v1187_v45  ;;  %v1195_v11 = vmul.f32 %v1193_v10, %v1187_v45  ;;  %1165 = vst.msk [vmem:[#allocation4 + $0x8] sm:$0xff] %vm577_vm5, %v1163_v46  ;;  %v1170_v12 = vmul.f32 %v1168_v47, %v1163_v46  ;;  %v1251_v45 = vld [vmem:[#allocation3 + $0x78] sm:$0xff] }
 0x3e4   : > { %v1200_v31 = vadd.f32 %v1198_v13, %v1195_v11  ;;  %v1175_v56 = vadd.f32 %v1173_v48, %v1170_v12 }
 0x3e5   : > { %v1265_v55 = vld [vmem:[#allocation4] ss:$16 sm:$0x3]  ;;  %v1279_v61 = vld [vmem:[#allocation4 + $0x1] ss:$16 sm:$0x3] }
 0x3e6   : > { %1203 = vst.msk [vmem:[#allocation4 + $0x30] sm:$0xff] %vm577_vm5, %v1200_v31  ;;  %v1208_v62 = vmul.f32 %v1206_v15, %v1200_v31  ;;  %1178 = vst.msk [vmem:[#allocation4 + $0x18] sm:$0xff] %vm577_vm5, %v1175_v56  ;;  %v1183_v2 = vmul.f32 %v1181_v16, %v1175_v56  ;;  %v1293_v44 = vld [vmem:[#allocation4 + $0x2] ss:$16 sm:$0x3] }
 0x3e7   : > { %v1307_v10 = vld [vmem:[#allocation4 + $0x3] ss:$16 sm:$0x3] }
 0x3e8   : > { %v1213_v19 = vadd.f32 %v1211_v17, %v1208_v62  ;;  %v1188_v20 = vadd.f32 %v1186_v18, %v1183_v2  ;;  %v1321_v62 = vld [vmem:[#allocation4 + $0x4] ss:$16 sm:$0x3]  ;;  %v2444_v2 = vpop.permute.xlu1 %1371 }
 0x3ea   : > { %1216 = vst.msk [vmem:[#allocation4 + $0x40] sm:$0xff] %vm577_vm5, %v1213_v19  ;;  %v1221_v9 = vmul.f32 %v1219_v21, %v1213_v19  ;;  %1191 = vst.msk [vmem:[#allocation4 + $0x28] sm:$0xff] %vm577_vm5, %v1188_v20  ;;  %v1196_v24 = vmul.f32 %v1194_v22, %v1188_v20 }
 0x3ec   : > { %v1226_v27 = vadd.f32 %v1224_v25, %v1221_v9  ;;  %v1201_v28 = vadd.f32 %v1199_v26, %v1196_v24  ;;  %v1274_v9 = vpop.permute.xlu0 %1273  ;;  %v1264_v24 = vmul.f32 %v1673_v5, %v2248_v59 }
 0x3ed   : > { %v1266_v57 = vld [vmem:[#allocation4] ss:$16 sm:$0xc]  ;;  %v1280_v58 = vld [vmem:[#allocation4 + $0x1] ss:$16 sm:$0xc] }
 0x3ee   : > { %1229 = vst.msk [vmem:[#allocation4 + $0x50] sm:$0xff] %vm577_vm5, %v1226_v27  ;;  %v1234_v32 = vmul.f32 %v1232_v29, %v1226_v27  ;;  %1204 = vst.msk [vmem:[#allocation4 + $0x38] sm:$0xff] %vm577_vm5, %v1201_v28  ;;  %v1209_v33 = vmul.f32 %v1207_v30, %v1201_v28  ;;  %v1294_v63 = vld [vmem:[#allocation4 + $0x2] ss:$16 sm:$0xc]  ;;  %v1267_v6 = vor.u32 %v1266_v57, %v1265_v55 }
 0x3ef   : > { %v1281_v7 = vor.u32 %v1280_v58, %v1279_v61  ;;  %v1308_v47 = vld [vmem:[#allocation4 + $0x3] ss:$16 sm:$0xc]  ;;  %v1295_v13 = vor.u32 %v1294_v63, %v1293_v44  ;;  %v1322_v31 = vld [vmem:[#allocation4 + $0x4] ss:$16 sm:$0xc] }
 0x3f0   : > { %v1239_v35 = vadd.f32 %v1237_v4, %v1234_v32  ;;  %v1214_v36 = vadd.f32 %v1212_v34, %v1209_v33  ;;  %v1309_v21 = vor.u32 %v1308_v47, %v1307_v10  ;;  %v1336_v22 = vld [vmem:[#allocation4 + $0x5] ss:$16 sm:$0xc]  ;;  %v1323_v30 = vor.u32 %v1322_v31, %v1321_v62  ;;  %v1350_v33 = vld [vmem:[#allocation4 + $0x6] ss:$16 sm:$0xc] }
 0x3f1   : > { %v1335_v32 = vld [vmem:[#allocation4 + $0x5] ss:$16 sm:$0x3]  ;;  %v1363_v57 = vld [vmem:[#allocation4 + $0x7] ss:$16 sm:$0x3] }
 0x3f2   : > { %1242 = vst.msk [vmem:[#allocation4 + $0x60] sm:$0xff] %vm577_vm5, %v1239_v35  ;;  %v1247_v40 = vmul.f32 %v1245_v38, %v1239_v35  ;;  %1217 = vst.msk [vmem:[#allocation4 + $0x48] sm:$0xff] %vm577_vm5, %v1214_v36  ;;  %v1222_v41 = vmul.f32 %v1220_v39, %v1214_v36  ;;  %v1337_v34 = vor.u32 %v1336_v22, %v1335_v32 }
 0x3f4   : > { %v1252_v49 = vadd.f32 %v1250_v42, %v1247_v40  ;;  %v1227_v50 = vadd.f32 %v1225_v43, %v1222_v41  ;;  %v1349_v41 = vld [vmem:[#allocation4 + $0x6] ss:$16 sm:$0x3]  ;;  %v1364_v42 = vld [vmem:[#allocation4 + $0x7] ss:$16 sm:$0xc] }
 0x3f5   : > { %v1268_v1 = vld [vmem:[#allocation4] ss:$16 sm:$0x30]  ;;  %v1282_v3 = vld [vmem:[#allocation4 + $0x1] ss:$16 sm:$0x30]  ;;  %v1351_v59 = vor.u32 %v1350_v33, %v1349_v41  ;;  %v1365_v63 = vor.u32 %v1364_v42, %v1363_v57 }
 0x3f6   : > { %1255 = vst.msk [vmem:[#allocation4 + $0x70] sm:$0xff] %vm577_vm5, %v1252_v49  ;;  %1230 = vst.msk [vmem:[#allocation4 + $0x58] sm:$0xff] %vm577_vm5, %v1227_v50  ;;  %v1235_v52 = vmul.f32 %v1233_v51, %v1227_v50  ;;  %v1296_v46 = vld [vmem:[#allocation4 + $0x2] ss:$16 sm:$0x30]  ;;  %v1269_v11 = vor.u32 %v1268_v1, %v1267_v6  ;;  %v1283_v12 = vor.u32 %v1282_v3, %v1281_v7  ;;  %v1386_v50 = vpop.permute.xlu1 %1385 }
 0x3f7   : > { %v1310_v48 = vld [vmem:[#allocation4 + $0x3] ss:$16 sm:$0x30]  ;;  %v1297_v19 = vor.u32 %v1296_v46, %v1295_v13  ;;  %v1324_v26 = vld [vmem:[#allocation4 + $0x4] ss:$16 sm:$0x30] }
 0x3f8   : > { %v1240_v0 = vadd.f32 %v1238_v53, %v1235_v52  ;;  %v1311_v29 = vor.u32 %v1310_v48, %v1309_v21  ;;  %v1338_v35 = vld [vmem:[#allocation4 + $0x5] ss:$16 sm:$0x30]  ;;  %v1325_v40 = vor.u32 %v1324_v26, %v1323_v30  ;;  %v1352_v49 = vld [vmem:[#allocation4 + $0x6] ss:$16 sm:$0x30] }
 0x3f9   : > { %v1339_v55 = vor.u32 %v1338_v35, %v1337_v34  ;;  %v1366_v58 = vld [vmem:[#allocation4 + $0x7] ss:$16 sm:$0x30]  ;;  %v1353_v5 = vor.u32 %v1352_v49, %v1351_v59  ;;  %v1377_v6 = vld [vmem:[#allocation4 + $0x8] ss:$16 sm:$0x3] }
 0x3fa   : > { %1243 = vst.msk [vmem:[#allocation4 + $0x68] sm:$0xff] %vm577_vm5, %v1240_v0  ;;  %v1248_v8 = vmul.f32 %v1246_v60, %v1240_v0  ;;  %v1316_v60 = vpop.permute.xlu0 %1315  ;;  %v1378_v0 = vld [vmem:[#allocation4 + $0x8] ss:$16 sm:$0xc]  ;;  %v1367_v44 = vor.u32 %v1366_v58, %v1365_v63  ;;  %v1414_v48 = vpop.permute.xlu1 %1413 }
 0x3fb   : > { %v1392_v7 = vld [vmem:[#allocation4 + $0x9] ss:$16 sm:$0xc]  ;;  %v1379_v47 = vor.u32 %v1378_v0, %v1377_v6  ;;  %v1433_v35 = vld [vmem:[#allocation4 + $0xc] ss:$16 sm:$0x3] }
 0x3fc   : > { %v1253_v56 = vadd.f32 %v1251_v45, %v1248_v8  ;;  %v1461_v0 = vld [vmem:[#allocation4 + $0xe] ss:$16 sm:$0x3] }
 0x3fd   : > { %v1270_v15 = vld [vmem:[#allocation4] ss:$16 sm:$0xc0]  ;;  %v1284_v16 = vld [vmem:[#allocation4 + $0x1] ss:$16 sm:$0xc0] }
 0x3fe   : > { %v1271_v17 = vor.u32 %v1270_v15, %v1269_v11  ;;  %v1285_v18 = vor.u32 %v1284_v16, %v1283_v12  ;;  %v1298_v20 = vld [vmem:[#allocation4 + $0x2] ss:$16 sm:$0xc0]  ;;  %1256 = vst.msk [vmem:[#allocation4 + $0x78] sm:$0xff] %vm577_vm5, %v1253_v56 }
 0x3ff   : > { %v1312_v25 = vld [vmem:[#allocation4 + $0x3] ss:$16 sm:$0xc0]  ;;  %v1299_v28 = vor.u32 %v1298_v20, %v1297_v19  ;;  %v1326_v4 = vld [vmem:[#allocation4 + $0x4] ss:$16 sm:$0xc0]  ;;  %v1358_v20 = vpop.permute.xlu0 %1357 }
 0x400   : > { %v1276_v27 = vmul.f32 %v1274_v9, %v1271_v17  ;;  %v1290_v38 = vmul.f32 %v2422_v14, %v1285_v18  ;;  %v1313_v39 = vor.u32 %v1312_v25, %v1311_v29  ;;  %v1340_v43 = vld [vmem:[#allocation4 + $0x5] ss:$16 sm:$0xc0]  ;;  %v1327_v53 = vor.u32 %v1326_v4, %v1325_v40  ;;  %v1354_v61 = vld [vmem:[#allocation4 + $0x6] ss:$16 sm:$0xc0] }
 0x401   : > { %v1304_v52 = vmul.f32 %v2428_v23, %v1299_v28  ;;  %v1341_v3 = vor.u32 %v1340_v43, %v1339_v55  ;;  %v1368_v8 = vld [vmem:[#allocation4 + $0x7] ss:$16 sm:$0xc0]  ;;  %v1380_v45 = vld [vmem:[#allocation4 + $0x8] ss:$16 sm:$0x30]  ;;  %v1355_v10 = vor.u32 %v1354_v61, %v1353_v5 }
 0x402   : > { %v1277_v36 = vadd.f32 %v1276_v27, %v1264_v24  ;;  %v1318_v1 = vmul.f32 %v1316_v60, %v1313_v39  ;;  %v1332_v23 = vmul.f32 %v2432_v37, %v1327_v53  ;;  %v1391_v11 = vld [vmem:[#allocation4 + $0x9] ss:$16 sm:$0x3]  ;;  %v1406_v12 = vld [vmem:[#allocation4 + $0xa] ss:$16 sm:$0xc]  ;;  %v1369_v62 = vor.u32 %v1368_v8, %v1367_v44 }
 0x403   : > { %v1393_v31 = vor.u32 %v1392_v7, %v1391_v11  ;;  %v1394_v56 = vld [vmem:[#allocation4 + $0x9] ss:$16 sm:$0x30]  ;;  %v1346_v16 = vmul.f32 %v2438_v54, %v1341_v3  ;;  %v1381_v17 = vor.u32 %v1380_v45, %v1379_v47  ;;  %v1405_v18 = vld [vmem:[#allocation4 + $0xa] ss:$16 sm:$0x3]  ;;  %v1360_v24 = vmul.f32 %v1358_v20, %v1355_v10  ;;  %v1400_v53 = vpop.permute.xlu0 %1399 }
 0x404   : > { %v1291_v51 = vadd.f32 %v1290_v38, %v1277_v36  ;;  %v1420_v19 = vld [vmem:[#allocation4 + $0xb] ss:$16 sm:$0xc]  ;;  %v1407_v22 = vor.u32 %v1406_v12, %v1405_v18  ;;  %v1408_v9 = vld [vmem:[#allocation4 + $0xa] ss:$16 sm:$0x30]  ;;  %v1374_v54 = vmul.f32 %v2444_v2, %v1369_v62  ;;  %v1428_v38 = vpop.permute.xlu1 %1427 }
 0x405   : > { %v1382_v13 = vld [vmem:[#allocation4 + $0x8] ss:$16 sm:$0xc0]  ;;  %v1396_v21 = vld [vmem:[#allocation4 + $0x9] ss:$16 sm:$0xc0]  ;;  %v1395_v26 = vor.u32 %v1394_v56, %v1393_v31 }
 0x406   : > { %v1305_v14 = vadd.f32 %v1304_v52, %v1291_v51  ;;  %v1383_v25 = vor.u32 %v1382_v13, %v1381_v17  ;;  %v1419_v27 = vld [vmem:[#allocation4 + $0xb] ss:$16 sm:$0x3]  ;;  %v1434_v28 = vld [vmem:[#allocation4 + $0xc] ss:$16 sm:$0xc]  ;;  %v1409_v34 = vor.u32 %v1408_v9, %v1407_v22 }
 0x407   : > { %v1410_v29 = vld [vmem:[#allocation4 + $0xa] ss:$16 sm:$0xc0]  ;;  %v1421_v30 = vor.u32 %v1420_v19, %v1419_v27  ;;  %v1422_v32 = vld [vmem:[#allocation4 + $0xb] ss:$16 sm:$0x30]  ;;  %v1397_v4 = vor.u32 %v1396_v21, %v1395_v26  ;;  %v1435_v40 = vor.u32 %v1434_v28, %v1433_v35  ;;  %v1442_v31 = vpop.permute.xlu0 %1441 }
 0x408   : > { %v1319_v46 = vadd.f32 %v1318_v1, %v1305_v14  ;;  %v1448_v36 = vld [vmem:[#allocation4 + $0xd] ss:$16 sm:$0xc]  ;;  %v1424_v39 = vld [vmem:[#allocation4 + $0xb] ss:$16 sm:$0xc0]  ;;  %v1388_v43 = vmul.f32 %v1386_v50, %v1383_v25  ;;  %v1411_v59 = vor.u32 %v1410_v29, %v1409_v34  ;;  %v1456_v45 = vpop.permute.xlu1 %1455 }
 0x409   : > { %v1436_v41 = vld [vmem:[#allocation4 + $0xc] ss:$16 sm:$0x30]  ;;  %v1423_v49 = vor.u32 %v1422_v32, %v1421_v30  ;;  %v1447_v51 = vld [vmem:[#allocation4 + $0xd] ss:$16 sm:$0x3]  ;;  %v1402_v2 = vmul.f32 %v1400_v53, %v1397_v4 }
 0x40a   : > { %v1333_v15 = vadd.f32 %v1332_v23, %v1319_v46  ;;  %v1462_v52 = vld [vmem:[#allocation4 + $0xe] ss:$16 sm:$0xc]  ;;  %v1438_v55 = vld [vmem:[#allocation4 + $0xc] ss:$16 sm:$0xc0]  ;;  %v1449_v57 = vor.u32 %v1448_v36, %v1447_v51  ;;  %v1437_v63 = vor.u32 %v1436_v41, %v1435_v40  ;;  %v1416_v7 = vmul.f32 %v1414_v48, %v1411_v59 }
 0x40b   : > { %v1450_v58 = vld [vmem:[#allocation4 + $0xd] ss:$16 sm:$0x30]  ;;  %v1425_v61 = vor.u32 %v1424_v39, %v1423_v49  ;;  %v1476_v14 = vld [vmem:[#allocation4 + $0xf] ss:$16 sm:$0xc]  ;;  %v1463_v3 = vor.u32 %v1462_v52, %v1461_v0  ;;  %v1484_v9 = vpop.permute.xlu0 %1483 }
 0x40c   : > { %v1347_v37 = vadd.f32 %v1346_v16, %v1333_v15  ;;  %v1452_v1 = vld [vmem:[#allocation4 + $0xd] ss:$16 sm:$0xc0]  ;;  %v1464_v5 = vld [vmem:[#allocation4 + $0xe] ss:$16 sm:$0x30]  ;;  %v1439_v50 = vor.u32 %v1438_v55, %v1437_v63  ;;  %v1451_v44 = vor.u32 %v1450_v58, %v1449_v57  ;;  %v1470_v20 = vpop.permute.xlu1 %1469 }
 0x40d   : > { %v1475_v8 = vld [vmem:[#allocation4 + $0xf] ss:$16 sm:$0x3]  ;;  %v1466_v46 = vld [vmem:[#allocation4 + $0xe] ss:$16 sm:$0xc0]  ;;  %v1430_v11 = vmul.f32 %v1428_v38, %v1425_v61  ;;  %v1465_v13 = vor.u32 %v1464_v5, %v1463_v3 }
 0x40e   : > { %v1361_v33 = vadd.f32 %v1360_v24, %v1347_v37  ;;  %v1477_v23 = vor.u32 %v1476_v14, %v1475_v8  ;;  %v1478_v10 = vld [vmem:[#allocation4 + $0xf] ss:$16 sm:$0x30]  ;;  %v1453_v12 = vor.u32 %v1452_v1, %v1451_v44  ;;  %v1444_v16 = vmul.f32 %v1442_v31, %v1439_v50  ;;  %v1942_v30 = vld [vmem:[%s2162_s19] sm:$0xff]  ;;  %s2043_s19 = smov [#allocation5]  }
 0x40f   : > { %v1480_v56 = vld [vmem:[#allocation4 + $0xf] ss:$16 sm:$0xc0]  ;;  %v1467_v62 = vor.u32 %v1466_v46, %v1465_v13  ;;  %s1947_s20 = sshll.u32 %s2043_s19, 4  ;;  %s1948_s20 = int_to_ptr.vmem [resolvable:$false] %s1947_s20 }
 0x410   : > { %v1375_v42 = vadd.f32 %v1374_v54, %v1361_v33  ;;  %v1479_v17 = vor.u32 %v1478_v10, %v1477_v23  ;;  %v1458_v48 = vmul.f32 %v1456_v45, %v1453_v12  ;;  %v1496_v26 = vpop.permute.xlu1 %1495  ;;  %s1949_s28 = scalar_lea.vmem %s1948_s20, 256  ;;  %p1950_p0 = scmp.lt.s32.totalorder %s2462_s1, %s1948_s20 }
 0x411   : > { %v1472_v22 = vmul.f32 %v1470_v20, %v1467_v62  ;;  %p1951_p1 = scmp.lt.s32.totalorder %s1949_s28, %s1943_s18 }
 0x412   : > { %v1389_v60 = vadd.f32 %v1388_v43, %v1375_v42  ;;  %v1481_v19 = vor.u32 %v1480_v56, %v1479_v17 }
 0x413   : > { %p1952_p2 = por %p1951_p1, %p1950_p0 }
 0x414   : > { %v1403_v6 = vadd.f32 %v1402_v2, %v1389_v60  ;;  %v1486_v24 = vmul.f32 %v1484_v9, %v1481_v19 }
 0x415   : > { %p1953_p3 = pnand %p1952_p2, %p1946_p13 }
 0x416   : > { %v1417_v47 = vadd.f32 %v1416_v7, %v1403_v6 }
 0x418   : > { %v1431_v15 = vadd.f32 %v1430_v11, %v1417_v47 }
 0x41a   : > { %v1445_v18 = vadd.f32 %v1444_v16, %v1431_v15 }
 0x41c   : > { %v1459_v21 = vadd.f32 %v1458_v48, %v1445_v18 }
 0x41e   : > { %v1473_v37 = vadd.f32 %v1472_v22, %v1459_v21 }
 0x420   : > { %v1487_v25 = vadd.f32 %v1486_v24, %v1473_v37 }
 0x422   : > { %v1498_v27 = vmul.f32 %v1496_v26, %v1487_v25 }
 0x424   : > { %v1499_v28 = vpack.c.bf16 %v1498_v27, %v1498_v27 }
 0x426   : > { %1760 = vmatmul.mubr.msk.bf16.vlgmr.msra.gmra.mrb[4].mxu0 %vm577_vm5, %v1499_v28 }
 0x4f9   : > { %v1569_v29 = vpop.f32.mrb[4].mxu0 }
 0x4fa   : > { %v1570_v32 = vadd.f32 %v1942_v30, %v1569_v29  ;;  %v1761_v33 = vpop.f32.mrb[5].mxu0 }
 0x4fb   : > { %v1572_v54 = vpop.f32.mrb[6].mxu0 }
 0x4fc   : > { %v1762_v4 = vpop.f32.mrb[7].mxu0  ;;  %1575 = vst.msk [vmem:[%s404_s0] sm:$0xff] %vm412_vm0, %v1570_v32 }
 0x4fd   : > { %1956 = shalt.err (!%p1953_p3)
}
 0x4fe   : > { %s1957_s26 = scalar_lea.hbm %s2460_s17, 128  ;;  %s1961_s15 = scalar_lea.hbm %s2515_s12, 256 }
 0x4ff   : > { %p1958_p4 = scmp.ne.s32.totalorder %s2460_s17, %s1957_s26  ;;  %p1962_p9 = scmp.lt.u32.totalorder %s2460_s17, %s2515_s12 }
 0x500   : > { %p1963_p10 = scmp.lt.u32.totalorder %s1961_s15, %s1957_s26  ;;  %p1965_p12 = scmp.lt.u32.totalorder %s1957_s26, %s2460_s17 }
 0x501   : > { %p1959_p7 = pnand %p1958_p4, %p2147_p5 }
 0x502   : > { %p1964_p11 = por %p1963_p10, %p1962_p9 }
 0x503   : > { %p1960_p8 = pneg %p1959_p7 }
 0x504   : > { %p1966_p13 = por %p1965_p12, %p1964_p11 }
 0x506   : > { %p1967_p0 = pnand %p1966_p13, %p1960_p8 }
 0x508   : > { %1970 = shalt.err (!%p1967_p0)
}
 0x509   : > { %1775 = dma.vmem_to_hbm [thread:$0]  (%p2147_p5), %s2462_s1, 128, %s2460_s17, %s1577_s25  }
 0x50a PF: > { %p1781_p1 = scmp.ge.s32.totalorder %s2005_s24, 2  ;;  %s1602_s18 = sand.u32 1, %s1993_s21  }
 0x50b   : > { %s1603_s20 = scalar_lea.sflag [#allocation6], %s1602_s18 }
 0x50c   : > { %p1778_p2 = pnand %p1781_p1, %p2151_p6 }
 0x50e   : > { %1988 = dma.done.wait (!%p1778_p2), %s1603_s20, 128  }
 0x50f   : > { %1990 = vsyncadd (!%p1778_p2), %s1603_s20, 4294967168  ;;  %p22_p3 = scmp.ge.s32.totalorder %s2134_s27, 4   ;;  %s2522_s21 = smov %s1997_s22 }
 0x510   : > { %s2523_s22 = smov %s2001_s23  ;;  %s2524_s23 = smov %s2145_s30 }
 0x511   : > { %s2525_s24 = smov %s2134_s27  ;;  %24 = sbr.rel (!%p22_p3) target bundleno = 6 (0x6), region = 169 }
 0x518   :  { %1608 = vsyncpa [#allocation6], 1 }
 0x519   :  { %1610 = vsyncpa [#allocation6 + $0x1], 1 }

</bundles_post_ra>
